<compile_context>
chip_gen: v5e
topology: v5e:2x2
jax: 0.10.0
libtpu: 0.0.40
codegen_flags: <defaults>
</compile_context>

<pallas_src>
import functools
from typing import NamedTuple

import jax
import jax.numpy as jnp
from jax.experimental import pallas as pl
from jax.experimental.pallas import tpu as pltpu

LANE = 128          # every feature (lane) dim padded to a multiple of this
BATCH_ALIGN = 16    # batch rows padded/tiled to multiples of this (bf16-safe sublanes)


def _round_up(n, m):
    return ((n + m - 1) // m) * m


def _pad2(a, rows, cols):
    return jnp.pad(a, ((0, rows - a.shape[0]), (0, cols - a.shape[1])))


class VAEDims(NamedTuple):
    input_dim: int
    hidden: int
    latent: int
    obs_out: int
    act_out: int
    ip: int
    hp: int
    lp: int
    op: int
    ap: int


def vae_kernel(x_ref, eps_ref,
               we1_ref, be1_ref, we2_ref, be2_ref,
               wd1_ref, bd1_ref, wo2_ref, bo2_ref, wa2_ref, ba2_ref,
               out_ref, *, hp, op, ap, lp):
    f32 = jnp.float32
    bf16 = jnp.bfloat16

    # ---- encoder: Linear -> ReLU -> fused [hidden, 2*latent] head ----
    h = jnp.dot(x_ref[...], we1_ref[...], preferred_element_type=f32) + be1_ref[...]
    h = jnp.maximum(h, 0.0)
    enc = jnp.dot(h.astype(bf16), we2_ref[...], preferred_element_type=f32) + be2_ref[...]
    mu = enc[:, :lp]            # split at a 128-lane boundary: no relayout
    log_var = enc[:, lp:]

    # ---- reparameterize (f32): z = mu + eps * exp(0.5 * log_var) ----
    # padded lanes: mu = log_var = eps = 0  =>  padded z lanes stay exactly 0
    z = mu + eps_ref[...] * jnp.exp(0.5 * log_var)

    # ---- fused decoder first layers: one [latent, 2*hidden] matmul + one ReLU ----
    hd = jnp.dot(z.astype(bf16), wd1_ref[...], preferred_element_type=f32) + bd1_ref[...]
    hd = jnp.maximum(hd, 0.0).astype(bf16)
    ho = hd[:, :hp]             # 128-lane-boundary split
    ha = hd[:, hp:]

    # ---- decoder second layers ----
    recon_obs = jnp.dot(ho, wo2_ref[...], preferred_element_type=f32) + bo2_ref[...]
    recon_act = jnp.dot(ha, wa2_ref[...], preferred_element_type=f32) + ba2_ref[...]

    # ---- packed lane-dense output slab: [recon_obs | recon_act | mu | log_var] ----
    out_ref[:, 0:op] = recon_obs
    out_ref[:, op:op + ap] = recon_act
    out_ref[:, op + ap:op + ap + lp] = mu
    out_ref[:, op + ap + lp:] = log_var


def pack_params(params, weight_dtype=jnp.bfloat16):
    """One-time weight packing (do NOT call per step): pad every feature dim to
    a multiple of 128, fuse the encoder head and the two decoder first layers,
    and cast weights to bf16 (biases stay f32: added to f32 MXU accumulators).
    NOTE: zero padding of weights/biases (and of eps in the wrapper) is what
    keeps padded lanes of z / hd / outputs exactly zero."""
    input_dim, hidden = params["we1"].shape
    latent = params["we2"].shape[1] // 2
    obs_out = params["wo2"].shape[1]
    act_out = params["wa2"].shape[1]
    ip, hp, lp, op, ap = (_round_up(d, LANE)
                          for d in (input_dim, hidden, latent, obs_out, act_out))

    we1 = _pad2(params["we1"], ip, hp).astype(weight_dtype)
    be1 = _pad2(params["be1"], 1, hp)
    # fused encoder head [hp, 2*lp] = [mu-head | log_var-head], each lane-padded
    we2 = jnp.concatenate([_pad2(params["we2"][:, :latent], hp, lp),
                           _pad2(params["we2"][:, latent:], hp, lp)],
                          axis=1).astype(weight_dtype)
    be2 = jnp.concatenate([_pad2(params["be2"][:, :latent], 1, lp),
                           _pad2(params["be2"][:, latent:], 1, lp)], axis=1)
    # fused decoder first layers [lp, 2*hp] = [obs-decoder | act-decoder]
    wd1 = jnp.concatenate([_pad2(params["wo1"], lp, hp),
                           _pad2(params["wa1"], lp, hp)], axis=1).astype(weight_dtype)
    bd1 = jnp.concatenate([_pad2(params["bo1"], 1, hp),
                           _pad2(params["ba1"], 1, hp)], axis=1)
    wo2 = _pad2(params["wo2"], hp, op).astype(weight_dtype)
    bo2 = _pad2(params["bo2"], 1, op)
    wa2 = _pad2(params["wa2"], hp, ap).astype(weight_dtype)
    ba2 = _pad2(params["ba2"], 1, ap)

    weights = (we1, be1, we2, be2, wd1, bd1, wo2, bo2, wa2, ba2)
    dims = VAEDims(input_dim, hidden, latent, obs_out, act_out, ip, hp, lp, op, ap)
    return weights, dims


@functools.partial(jax.jit, static_argnames=("dims", "single_buffer_weights"))
def vae_forward(x, eps, weights, dims, single_buffer_weights=True):
    B = x.shape[0]
    ip, hp, lp, op, ap = dims.ip, dims.hp, dims.lp, dims.op, dims.ap
    out_width = op + ap + 2 * lp

    # batch tiling: aligned tiles up to 512 rows; prefer >=2 grid tiles so the
    # software pipeline has depth and multi-core chips can split the batch axis
    bp = _round_up(B, BATCH_ALIGN)
    tb = min(512, bp)
    if bp >= 2 * BATCH_ALIGN and tb == bp:
        tb = max(BATCH_ALIGN, _round_up(bp // 2, BATCH_ALIGN))
    bp = _round_up(bp, tb)
    n_tiles = bp // tb

    xp = _pad2(x, bp, ip).astype(jnp.bfloat16)   # MXU operand -> bf16
    epsp = _pad2(eps, bp, lp)                    # zero-padded noise keeps padded z == 0

    kernel = functools.partial(vae_kernel, hp=hp, op=op, ap=ap, lp=lp)

    def batch_spec(cols):
        return pl.BlockSpec((tb, cols), lambda i: (i, 0))

    def const_spec(arr):
        if single_buffer_weights:
            # weights never change block index -> one VMEM buffer is enough
            return pl.BlockSpec(arr.shape, lambda i: (0, 0),
                                pipeline_mode=pl.Buffered(1))
        return pl.BlockSpec(arr.shape, lambda i: (0, 0))

    # explicit VMEM budget: weights (worst case x2 buffers) + double-buffered
    # activation tiles + intermediates, 2x headroom, clamped to [16, 64] MiB.
    weight_bytes = sum(int(w.size) * w.dtype.itemsize for w in weights)
    act_bytes = tb * (ip * 2 + lp * 4 + out_width * 4)
    inter_bytes = tb * (3 * hp + 3 * lp) * 4
    vmem_limit = 2 * (2 * weight_bytes + 2 * act_bytes + inter_bytes)
    vmem_limit = int(min(max(vmem_limit, 16 * 1024 * 1024), 64 * 1024 * 1024))

    out = pl.pallas_call(
        kernel,
        out_shape=jax.ShapeDtypeStruct((bp, out_width), jnp.float32),
        grid=(n_tiles,),
        in_specs=[batch_spec(ip), batch_spec(lp)] + [const_spec(w) for w in weights],
        out_specs=batch_spec(out_width),
        compiler_params=pltpu.CompilerParams(
            dimension_semantics=("parallel",),
            vmem_limit_bytes=vmem_limit),
    )(xp, epsp, *weights)

    # slice the packed slab back to the real (unpadded) outputs
    recon_obs = out[:B, :dims.obs_out]
    recon_act = out[:B, op:op + dims.act_out]
    mu = out[:B, op + ap:op + ap + dims.latent]
    log_var = out[:B, op + ap + lp:op + ap + lp + dims.latent]
    return recon_obs, recon_act, mu, log_var


def init_params(key, input_dim, hidden_dim, latent_dim, obs_output_dim, act_output_dim):
    def linear(k, fan_in, fan_out):
        kw, kb = jax.random.split(k)
        scale = 1.0 / jnp.sqrt(fan_in)
        w = jax.random.uniform(kw, (fan_in, fan_out), jnp.float32, -scale, scale)
        b = jax.random.uniform(kb, (1, fan_out), jnp.float32, -scale, scale)
        return w, b

    keys = jax.random.split(key, 6)
    we1, be1 = linear(keys[0], input_dim, hidden_dim)
    we2, be2 = linear(keys[1], hidden_dim, 2 * latent_dim)
    wo1, bo1 = linear(keys[2], latent_dim, hidden_dim)
    wo2, bo2 = linear(keys[3], hidden_dim, obs_output_dim)
    wa1, ba1 = linear(keys[4], latent_dim, hidden_dim)
    wa2, ba2 = linear(keys[5], hidden_dim, act_output_dim)
    return dict(we1=we1, be1=be1, we2=we2, be2=be2,
                wo1=wo1, bo1=bo1, wo2=wo2, bo2=bo2,
                wa1=wa1, ba1=ba1, wa2=wa2, ba2=ba2)


def vae_forward_ref(x, eps, params, dot_dtype=jnp.float32):
    """Pure-JAX reference.  With dot_dtype=bf16 it mirrors the kernel's
    cast-at-dot-boundary scheme so tolerances stay tight."""
    def dot(a, w):
        return jnp.dot(a.astype(dot_dtype), w.astype(dot_dtype),
                       preferred_element_type=jnp.float32)

    h = jnp.maximum(dot(x, params["we1"]) + params["be1"], 0.0)
    enc = dot(h, params["we2"]) + params["be2"]
    latent = enc.shape[-1] // 2
    mu, log_var = enc[:, :latent], enc[:, latent:]
    z = mu + eps * jnp.exp(0.5 * log_var)
    ho = jnp.maximum(dot(z, params["wo1"]) + params["bo1"], 0.0)
    recon_obs = dot(ho, params["wo2"]) + params["bo2"]
    ha = jnp.maximum(dot(z, params["wa1"]) + params["ba1"], 0.0)
    recon_act = dot(ha, params["wa2"]) + params["ba2"]
    return recon_obs, recon_act, mu, log_var


if __name__ == "__main__":
    # Small, forward-consistent shapes.
    B = 8
    input_dim, hidden_dim, latent_dim = 16, 32, 8
    obs_output_dim, act_output_dim = 16, 4

    key = jax.random.PRNGKey(0)
    kx, keps, kp = jax.random.split(key, 3)

    x = jax.random.normal(kx, (B, input_dim), jnp.float32)
    # eps plays the role of torch.randn_like(std) — drawn once, deterministically.
    eps = jax.random.normal(keps, (B, latent_dim), jnp.float32)
    params = init_params(kp, input_dim, hidden_dim, latent_dim,
                         obs_output_dim, act_output_dim)

    # One-time weight packing (the cached prologue: reuse `weights`/`dims` across calls).
    weights, dims = pack_params(params)

    try:
        outs = jax.block_until_ready(
            vae_forward(x, eps, weights, dims, single_buffer_weights=True))
    except Exception:
        # pl.Buffered(1) rejected by this jax/Mosaic version: fall back to
        # default double-buffered weight specs (semantics unchanged).
        outs = jax.block_until_ready(
            vae_forward(x, eps, weights, dims, single_buffer_weights=False))
    recon_obs, recon_act, mu, log_var = outs

    # Sanity check against a pure-JAX reference that mirrors the bf16 dot boundaries.
    r_obs, r_act, r_mu, r_lv = vae_forward_ref(x, eps, params, dot_dtype=jnp.bfloat16)
    assert jnp.allclose(recon_obs, r_obs, atol=5e-3)
    assert jnp.allclose(recon_act, r_act, atol=5e-3)
    assert jnp.allclose(mu, r_mu, atol=5e-3)
    assert jnp.allclose(log_var, r_lv, atol=5e-3)

    print("KERNEL_OK")
</pallas_src>

<mosaic_0001>
module attributes {stable_mosaic.version = 11 : i64} {
  func.func @vae_kernel(%arg0: i32, %arg1: memref<16x128xbf16, #tpu.memory_space<vmem>>, %arg2: memref<16x128xf32, #tpu.memory_space<vmem>>, %arg3: memref<128x128xbf16, #tpu.memory_space<vmem>>, %arg4: memref<1x128xf32, #tpu.memory_space<vmem>>, %arg5: memref<128x256xbf16, #tpu.memory_space<vmem>>, %arg6: memref<1x256xf32, #tpu.memory_space<vmem>>, %arg7: memref<128x256xbf16, #tpu.memory_space<vmem>>, %arg8: memref<1x256xf32, #tpu.memory_space<vmem>>, %arg9: memref<128x128xbf16, #tpu.memory_space<vmem>>, %arg10: memref<1x128xf32, #tpu.memory_space<vmem>>, %arg11: memref<128x128xbf16, #tpu.memory_space<vmem>>, %arg12: memref<1x128xf32, #tpu.memory_space<vmem>>, %arg13: memref<16x512xf32, #tpu.memory_space<vmem>>) attributes {dimension_semantics = [#tpu.dimension_semantics<parallel>], iteration_bounds = array<i64: 1>, scalar_prefetch = 0 : i64, scratch_operands = 0 : i64, tpu.core_type = #tpu.core_type<tc>, window_params = [{transform_indices = @transform_0, window_bounds = array<i64: 16, 128>}, {transform_indices = @transform_1, window_bounds = array<i64: 16, 128>}, {pipeline_mode = #tpu.pipeline_mode<synchronous>, transform_indices = @transform_2, window_bounds = array<i64: 128, 128>}, {pipeline_mode = #tpu.pipeline_mode<synchronous>, transform_indices = @transform_3, window_bounds = array<i64: 1, 128>}, {pipeline_mode = #tpu.pipeline_mode<synchronous>, transform_indices = @transform_4, window_bounds = array<i64: 128, 256>}, {pipeline_mode = #tpu.pipeline_mode<synchronous>, transform_indices = @transform_5, window_bounds = array<i64: 1, 256>}, {pipeline_mode = #tpu.pipeline_mode<synchronous>, transform_indices = @transform_6, window_bounds = array<i64: 128, 256>}, {pipeline_mode = #tpu.pipeline_mode<synchronous>, transform_indices = @transform_7, window_bounds = array<i64: 1, 256>}, {pipeline_mode = #tpu.pipeline_mode<synchronous>, transform_indices = @transform_8, window_bounds = array<i64: 128, 128>}, {pipeline_mode = #tpu.pipeline_mode<synchronous>, transform_indices = @transform_9, window_bounds = array<i64: 1, 128>}, {pipeline_mode = #tpu.pipeline_mode<synchronous>, transform_indices = @transform_10, window_bounds = array<i64: 128, 128>}, {pipeline_mode = #tpu.pipeline_mode<synchronous>, transform_indices = @transform_11, window_bounds = array<i64: 1, 128>}, {transform_indices = @transform_12, window_bounds = array<i64: 16, 512>}]} {
    %c0 = arith.constant 0 : index
    %c0_0 = arith.constant 0 : index
    %0 = vector.load %arg1[%c0, %c0_0] : memref<16x128xbf16, #tpu.memory_space<vmem>>, vector<16x128xbf16>
    %c0_1 = arith.constant 0 : index
    %c0_2 = arith.constant 0 : index
    %1 = vector.load %arg3[%c0_1, %c0_2] : memref<128x128xbf16, #tpu.memory_space<vmem>>, vector<128x128xbf16>
    %cst = arith.constant dense<0.000000e+00> : vector<16x128xf32>
    %2 = tpu.matmul %0, %1, %cst {dimension_numbers = #tpu.dot_dimension_numbers<[1], [0], [0], [1], [0, 0, 1, 1], [], []>} : vector<16x128xbf16>, vector<128x128xbf16>, vector<16x128xf32> -> vector<16x128xf32>
    %c0_3 = arith.constant 0 : index
    %c0_4 = arith.constant 0 : index
    %3 = vector.load %arg4[%c0_3, %c0_4] : memref<1x128xf32, #tpu.memory_space<vmem>>, vector<1x128xf32>
    %4 = vector.broadcast %3 : vector<1x128xf32> to vector<16x128xf32>
    %5 = arith.addf %2, %4 : vector<16x128xf32>
    %cst_5 = arith.constant 0.000000e+00 : f32
    %6 = vector.broadcast %cst_5 : f32 to vector<16x128xf32>
    %7 = arith.maximumf %5, %6 : vector<16x128xf32>
    %8 = arith.truncf %7 : vector<16x128xf32> to vector<16x128xbf16>
    %c0_6 = arith.constant 0 : index
    %c0_7 = arith.constant 0 : index
    %9 = vector.load %arg5[%c0_6, %c0_7] : memref<128x256xbf16, #tpu.memory_space<vmem>>, vector<128x256xbf16>
    %cst_8 = arith.constant dense<0.000000e+00> : vector<16x256xf32>
    %10 = tpu.matmul %8, %9, %cst_8 {dimension_numbers = #tpu.dot_dimension_numbers<[1], [0], [0], [1], [0, 0, 1, 1], [], []>} : vector<16x128xbf16>, vector<128x256xbf16>, vector<16x256xf32> -> vector<16x256xf32>
    %c0_9 = arith.constant 0 : index
    %c0_10 = arith.constant 0 : index
    %11 = vector.load %arg6[%c0_9, %c0_10] : memref<1x256xf32, #tpu.memory_space<vmem>>, vector<1x256xf32>
    %12 = vector.broadcast %11 : vector<1x256xf32> to vector<16x256xf32>
    %13 = arith.addf %10, %12 : vector<16x256xf32>
    %14 = vector.extract_strided_slice %13 {offsets = [0, 0], sizes = [16, 128], strides = [1, 1]} : vector<16x256xf32> to vector<16x128xf32>
    %15 = vector.extract_strided_slice %13 {offsets = [0, 128], sizes = [16, 128], strides = [1, 1]} : vector<16x256xf32> to vector<16x128xf32>
    %c0_11 = arith.constant 0 : index
    %c0_12 = arith.constant 0 : index
    %16 = vector.load %arg2[%c0_11, %c0_12] : memref<16x128xf32, #tpu.memory_space<vmem>>, vector<16x128xf32>
    %cst_13 = arith.constant 5.000000e-01 : f32
    %17 = vector.broadcast %cst_13 : f32 to vector<16x128xf32>
    %18 = arith.mulf %17, %15 : vector<16x128xf32>
    %19 = math.exp %18 : vector<16x128xf32>
    %20 = arith.mulf %16, %19 : vector<16x128xf32>
    %21 = arith.addf %14, %20 : vector<16x128xf32>
    %22 = arith.truncf %21 : vector<16x128xf32> to vector<16x128xbf16>
    %c0_14 = arith.constant 0 : index
    %c0_15 = arith.constant 0 : index
    %23 = vector.load %arg7[%c0_14, %c0_15] : memref<128x256xbf16, #tpu.memory_space<vmem>>, vector<128x256xbf16>
    %cst_16 = arith.constant dense<0.000000e+00> : vector<16x256xf32>
    %24 = tpu.matmul %22, %23, %cst_16 {dimension_numbers = #tpu.dot_dimension_numbers<[1], [0], [0], [1], [0, 0, 1, 1], [], []>} : vector<16x128xbf16>, vector<128x256xbf16>, vector<16x256xf32> -> vector<16x256xf32>
    %c0_17 = arith.constant 0 : index
    %c0_18 = arith.constant 0 : index
    %25 = vector.load %arg8[%c0_17, %c0_18] : memref<1x256xf32, #tpu.memory_space<vmem>>, vector<1x256xf32>
    %26 = vector.broadcast %25 : vector<1x256xf32> to vector<16x256xf32>
    %27 = arith.addf %24, %26 : vector<16x256xf32>
    %cst_19 = arith.constant 0.000000e+00 : f32
    %28 = vector.broadcast %cst_19 : f32 to vector<16x256xf32>
    %29 = arith.maximumf %27, %28 : vector<16x256xf32>
    %30 = arith.truncf %29 : vector<16x256xf32> to vector<16x256xbf16>
    %31 = vector.extract_strided_slice %30 {offsets = [0, 0], sizes = [16, 128], strides = [1, 1]} : vector<16x256xbf16> to vector<16x128xbf16>
    %32 = vector.extract_strided_slice %30 {offsets = [0, 128], sizes = [16, 128], strides = [1, 1]} : vector<16x256xbf16> to vector<16x128xbf16>
    %c0_20 = arith.constant 0 : index
    %c0_21 = arith.constant 0 : index
    %33 = vector.load %arg9[%c0_20, %c0_21] : memref<128x128xbf16, #tpu.memory_space<vmem>>, vector<128x128xbf16>
    %cst_22 = arith.constant dense<0.000000e+00> : vector<16x128xf32>
    %34 = tpu.matmul %31, %33, %cst_22 {dimension_numbers = #tpu.dot_dimension_numbers<[1], [0], [0], [1], [0, 0, 1, 1], [], []>} : vector<16x128xbf16>, vector<128x128xbf16>, vector<16x128xf32> -> vector<16x128xf32>
    %c0_23 = arith.constant 0 : index
    %c0_24 = arith.constant 0 : index
    %35 = vector.load %arg10[%c0_23, %c0_24] : memref<1x128xf32, #tpu.memory_space<vmem>>, vector<1x128xf32>
    %36 = vector.broadcast %35 : vector<1x128xf32> to vector<16x128xf32>
    %37 = arith.addf %34, %36 : vector<16x128xf32>
    %c0_25 = arith.constant 0 : index
    %c0_26 = arith.constant 0 : index
    %38 = vector.load %arg11[%c0_25, %c0_26] : memref<128x128xbf16, #tpu.memory_space<vmem>>, vector<128x128xbf16>
    %cst_27 = arith.constant dense<0.000000e+00> : vector<16x128xf32>
    %39 = tpu.matmul %32, %38, %cst_27 {dimension_numbers = #tpu.dot_dimension_numbers<[1], [0], [0], [1], [0, 0, 1, 1], [], []>} : vector<16x128xbf16>, vector<128x128xbf16>, vector<16x128xf32> -> vector<16x128xf32>
    %c0_28 = arith.constant 0 : index
    %c0_29 = arith.constant 0 : index
    %40 = vector.load %arg12[%c0_28, %c0_29] : memref<1x128xf32, #tpu.memory_space<vmem>>, vector<1x128xf32>
    %41 = vector.broadcast %40 : vector<1x128xf32> to vector<16x128xf32>
    %42 = arith.addf %39, %41 : vector<16x128xf32>
    %c0_30 = arith.constant 0 : index
    %c0_31 = arith.constant 0 : index
    %43 = vector.load %arg13[%c0_30, %c0_31] : memref<16x512xf32, #tpu.memory_space<vmem>>, vector<16x128xf32>
    tpu.vector_store %arg13[%c0_30, %c0_31], %37 {strides = array<i32>} : memref<16x512xf32, #tpu.memory_space<vmem>>, vector<16x128xf32>,
    %c0_32 = arith.constant 0 : index
    %c128 = arith.constant 128 : index
    %44 = vector.load %arg13[%c0_32, %c128] : memref<16x512xf32, #tpu.memory_space<vmem>>, vector<16x128xf32>
    tpu.vector_store %arg13[%c0_32, %c128], %42 {strides = array<i32>} : memref<16x512xf32, #tpu.memory_space<vmem>>, vector<16x128xf32>,
    %c0_33 = arith.constant 0 : index
    %c256 = arith.constant 256 : index
    %45 = vector.load %arg13[%c0_33, %c256] : memref<16x512xf32, #tpu.memory_space<vmem>>, vector<16x128xf32>
    tpu.vector_store %arg13[%c0_33, %c256], %14 {strides = array<i32>} : memref<16x512xf32, #tpu.memory_space<vmem>>, vector<16x128xf32>,
    %c0_34 = arith.constant 0 : index
    %c384 = arith.constant 384 : index
    %46 = vector.load %arg13[%c0_34, %c384] : memref<16x512xf32, #tpu.memory_space<vmem>>, vector<16x128xf32>
    tpu.vector_store %arg13[%c0_34, %c384], %15 {strides = array<i32>} : memref<16x512xf32, #tpu.memory_space<vmem>>, vector<16x128xf32>,
    return
  }
  func.func @transform_0(%arg0: i32) -> (i32, i32) {
    %c0_i32 = arith.constant 0 : i32
    %c0_i32_0 = arith.constant 0 : i32
    return %arg0, %c0_i32 : i32, i32
  }
  func.func @transform_1(%arg0: i32) -> (i32, i32) {
    %c0_i32 = arith.constant 0 : i32
    %c0_i32_0 = arith.constant 0 : i32
    return %arg0, %c0_i32 : i32, i32
  }
  func.func @transform_2(%arg0: i32) -> (i32, i32) {
    %c0_i32 = arith.constant 0 : i32
    %c0_i32_0 = arith.constant 0 : i32
    %c0_i32_1 = arith.constant 0 : i32
    return %c0_i32, %c0_i32_0 : i32, i32
  }
  func.func @transform_3(%arg0: i32) -> (i32, i32) {
    %c0_i32 = arith.constant 0 : i32
    %c0_i32_0 = arith.constant 0 : i32
    %c0_i32_1 = arith.constant 0 : i32
    return %c0_i32, %c0_i32_0 : i32, i32
  }
  func.func @transform_4(%arg0: i32) -> (i32, i32) {
    %c0_i32 = arith.constant 0 : i32
    %c0_i32_0 = arith.constant 0 : i32
    %c0_i32_1 = arith.constant 0 : i32
    return %c0_i32, %c0_i32_0 : i32, i32
  }
  func.func @transform_5(%arg0: i32) -> (i32, i32) {
    %c0_i32 = arith.constant 0 : i32
    %c0_i32_0 = arith.constant 0 : i32
    %c0_i32_1 = arith.constant 0 : i32
    return %c0_i32, %c0_i32_0 : i32, i32
  }
  func.func @transform_6(%arg0: i32) -> (i32, i32) {
    %c0_i32 = arith.constant 0 : i32
    %c0_i32_0 = arith.constant 0 : i32
    %c0_i32_1 = arith.constant 0 : i32
    return %c0_i32, %c0_i32_0 : i32, i32
  }
  func.func @transform_7(%arg0: i32) -> (i32, i32) {
    %c0_i32 = arith.constant 0 : i32
    %c0_i32_0 = arith.constant 0 : i32
    %c0_i32_1 = arith.constant 0 : i32
    return %c0_i32, %c0_i32_0 : i32, i32
  }
  func.func @transform_8(%arg0: i32) -> (i32, i32) {
    %c0_i32 = arith.constant 0 : i32
    %c0_i32_0 = arith.constant 0 : i32
    %c0_i32_1 = arith.constant 0 : i32
    return %c0_i32, %c0_i32_0 : i32, i32
  }
  func.func @transform_9(%arg0: i32) -> (i32, i32) {
    %c0_i32 = arith.constant 0 : i32
    %c0_i32_0 = arith.constant 0 : i32
    %c0_i32_1 = arith.constant 0 : i32
    return %c0_i32, %c0_i32_0 : i32, i32
  }
  func.func @transform_10(%arg0: i32) -> (i32, i32) {
    %c0_i32 = arith.constant 0 : i32
    %c0_i32_0 = arith.constant 0 : i32
    %c0_i32_1 = arith.constant 0 : i32
    return %c0_i32, %c0_i32_0 : i32, i32
  }
  func.func @transform_11(%arg0: i32) -> (i32, i32) {
    %c0_i32 = arith.constant 0 : i32
    %c0_i32_0 = arith.constant 0 : i32
    %c0_i32_1 = arith.constant 0 : i32
    return %c0_i32, %c0_i32_0 : i32, i32
  }
  func.func @transform_12(%arg0: i32) -> (i32, i32) {
    %c0_i32 = arith.constant 0 : i32
    %c0_i32_0 = arith.constant 0 : i32
    return %arg0, %c0_i32 : i32, i32
  }
}

module attributes {stable_mosaic.version = 11 : i64} {
  func.func @vae_kernel(%arg0: i32, %arg1: memref<16x128xbf16, #tpu.memory_space<vmem>>, %arg2: memref<16x128xf32, #tpu.memory_space<vmem>>, %arg3: memref<128x128xbf16, #tpu.memory_space<vmem>>, %arg4: memref<1x128xf32, #tpu.memory_space<vmem>>, %arg5: memref<128x256xbf16, #tpu.memory_space<vmem>>, %arg6: memref<1x256xf32, #tpu.memory_space<vmem>>, %arg7: memref<128x256xbf16, #tpu.memory_space<vmem>>, %arg8: memref<1x256xf32, #tpu.memory_space<vmem>>, %arg9: memref<128x128xbf16, #tpu.memory_space<vmem>>, %arg10: memref<1x128xf32, #tpu.memory_space<vmem>>, %arg11: memref<128x128xbf16, #tpu.memory_space<vmem>>, %arg12: memref<1x128xf32, #tpu.memory_space<vmem>>, %arg13: memref<16x512xf32, #tpu.memory_space<vmem>>) attributes {dimension_semantics = [#tpu.dimension_semantics<parallel>], iteration_bounds = array<i64: 1>, scalar_prefetch = 0 : i64, scratch_operands = 0 : i64, tpu.core_type = #tpu.core_type<tc>, window_params = [{transform_indices = @transform_0, window_bounds = array<i64: 16, 128>}, {transform_indices = @transform_1, window_bounds = array<i64: 16, 128>}, {pipeline_mode = #tpu.pipeline_mode<synchronous>, transform_indices = @transform_2, window_bounds = array<i64: 128, 128>}, {pipeline_mode = #tpu.pipeline_mode<synchronous>, transform_indices = @transform_3, window_bounds = array<i64: 1, 128>}, {pipeline_mode = #tpu.pipeline_mode<synchronous>, transform_indices = @transform_4, window_bounds = array<i64: 128, 256>}, {pipeline_mode = #tpu.pipeline_mode<synchronous>, transform_indices = @transform_5, window_bounds = array<i64: 1, 256>}, {pipeline_mode = #tpu.pipeline_mode<synchronous>, transform_indices = @transform_6, window_bounds = array<i64: 128, 256>}, {pipeline_mode = #tpu.pipeline_mode<synchronous>, transform_indices = @transform_7, window_bounds = array<i64: 1, 256>}, {pipeline_mode = #tpu.pipeline_mode<synchronous>, transform_indices = @transform_8, window_bounds = array<i64: 128, 128>}, {pipeline_mode = #tpu.pipeline_mode<synchronous>, transform_indices = @transform_9, window_bounds = array<i64: 1, 128>}, {pipeline_mode = #tpu.pipeline_mode<synchronous>, transform_indices = @transform_10, window_bounds = array<i64: 128, 128>}, {pipeline_mode = #tpu.pipeline_mode<synchronous>, transform_indices = @transform_11, window_bounds = array<i64: 1, 128>}, {transform_indices = @transform_12, window_bounds = array<i64: 16, 512>}]} {
    %c0 = arith.constant 0 : index
    %c0_0 = arith.constant 0 : index
    %0 = vector.load %arg1[%c0, %c0_0] : memref<16x128xbf16, #tpu.memory_space<vmem>>, vector<16x128xbf16>
    %c0_1 = arith.constant 0 : index
    %c0_2 = arith.constant 0 : index
    %1 = vector.load %arg3[%c0_1, %c0_2] : memref<128x128xbf16, #tpu.memory_space<vmem>>, vector<128x128xbf16>
    %cst = arith.constant dense<0.000000e+00> : vector<16x128xf32>
    %2 = tpu.matmul %0, %1, %cst {dimension_numbers = #tpu.dot_dimension_numbers<[1], [0], [0], [1], [0, 0, 1, 1], [], []>} : vector<16x128xbf16>, vector<128x128xbf16>, vector<16x128xf32> -> vector<16x128xf32>
    %c0_3 = arith.constant 0 : index
    %c0_4 = arith.constant 0 : index
    %3 = vector.load %arg4[%c0_3, %c0_4] : memref<1x128xf32, #tpu.memory_space<vmem>>, vector<1x128xf32>
    %4 = vector.broadcast %3 : vector<1x128xf32> to vector<16x128xf32>
    %5 = arith.addf %2, %4 : vector<16x128xf32>
    %cst_5 = arith.constant 0.000000e+00 : f32
    %6 = vector.broadcast %cst_5 : f32 to vector<16x128xf32>
    %7 = arith.maximumf %5, %6 : vector<16x128xf32>
    %8 = arith.truncf %7 : vector<16x128xf32> to vector<16x128xbf16>
    %c0_6 = arith.constant 0 : index
    %c0_7 = arith.constant 0 : index
    %9 = vector.load %arg5[%c0_6, %c0_7] : memref<128x256xbf16, #tpu.memory_space<vmem>>, vector<128x256xbf16>
    %cst_8 = arith.constant dense<0.000000e+00> : vector<16x256xf32>
    %10 = tpu.matmul %8, %9, %cst_8 {dimension_numbers = #tpu.dot_dimension_numbers<[1], [0], [0], [1], [0, 0, 1, 1], [], []>} : vector<16x128xbf16>, vector<128x256xbf16>, vector<16x256xf32> -> vector<16x256xf32>
    %c0_9 = arith.constant 0 : index
    %c0_10 = arith.constant 0 : index
    %11 = vector.load %arg6[%c0_9, %c0_10] : memref<1x256xf32, #tpu.memory_space<vmem>>, vector<1x256xf32>
    %12 = vector.broadcast %11 : vector<1x256xf32> to vector<16x256xf32>
    %13 = arith.addf %10, %12 : vector<16x256xf32>
    %14 = vector.extract_strided_slice %13 {offsets = [0, 0], sizes = [16, 128], strides = [1, 1]} : vector<16x256xf32> to vector<16x128xf32>
    %15 = vector.extract_strided_slice %13 {offsets = [0, 128], sizes = [16, 128], strides = [1, 1]} : vector<16x256xf32> to vector<16x128xf32>
    %c0_11 = arith.constant 0 : index
    %c0_12 = arith.constant 0 : index
    %16 = vector.load %arg2[%c0_11, %c0_12] : memref<16x128xf32, #tpu.memory_space<vmem>>, vector<16x128xf32>
    %cst_13 = arith.constant 5.000000e-01 : f32
    %17 = vector.broadcast %cst_13 : f32 to vector<16x128xf32>
    %18 = arith.mulf %17, %15 : vector<16x128xf32>
    %19 = math.exp %18 : vector<16x128xf32>
    %20 = arith.mulf %16, %19 : vector<16x128xf32>
    %21 = arith.addf %14, %20 : vector<16x128xf32>
    %22 = arith.truncf %21 : vector<16x128xf32> to vector<16x128xbf16>
    %c0_14 = arith.constant 0 : index
    %c0_15 = arith.constant 0 : index
    %23 = vector.load %arg7[%c0_14, %c0_15] : memref<128x256xbf16, #tpu.memory_space<vmem>>, vector<128x256xbf16>
    %cst_16 = arith.constant dense<0.000000e+00> : vector<16x256xf32>
    %24 = tpu.matmul %22, %23, %cst_16 {dimension_numbers = #tpu.dot_dimension_numbers<[1], [0], [0], [1], [0, 0, 1, 1], [], []>} : vector<16x128xbf16>, vector<128x256xbf16>, vector<16x256xf32> -> vector<16x256xf32>
    %c0_17 = arith.constant 0 : index
    %c0_18 = arith.constant 0 : index
    %25 = vector.load %arg8[%c0_17, %c0_18] : memref<1x256xf32, #tpu.memory_space<vmem>>, vector<1x256xf32>
    %26 = vector.broadcast %25 : vector<1x256xf32> to vector<16x256xf32>
    %27 = arith.addf %24, %26 : vector<16x256xf32>
    %cst_19 = arith.constant 0.000000e+00 : f32
    %28 = vector.broadcast %cst_19 : f32 to vector<16x256xf32>
    %29 = arith.maximumf %27, %28 : vector<16x256xf32>
    %30 = arith.truncf %29 : vector<16x256xf32> to vector<16x256xbf16>
    %31 = vector.extract_strided_slice %30 {offsets = [0, 0], sizes = [16, 128], strides = [1, 1]} : vector<16x256xbf16> to vector<16x128xbf16>
    %32 = vector.extract_strided_slice %30 {offsets = [0, 128], sizes = [16, 128], strides = [1, 1]} : vector<16x256xbf16> to vector<16x128xbf16>
    %c0_20 = arith.constant 0 : index
    %c0_21 = arith.constant 0 : index
    %33 = vector.load %arg9[%c0_20, %c0_21] : memref<128x128xbf16, #tpu.memory_space<vmem>>, vector<128x128xbf16>
    %cst_22 = arith.constant dense<0.000000e+00> : vector<16x128xf32>
    %34 = tpu.matmul %31, %33, %cst_22 {dimension_numbers = #tpu.dot_dimension_numbers<[1], [0], [0], [1], [0, 0, 1, 1], [], []>} : vector<16x128xbf16>, vector<128x128xbf16>, vector<16x128xf32> -> vector<16x128xf32>
    %c0_23 = arith.constant 0 : index
    %c0_24 = arith.constant 0 : index
    %35 = vector.load %arg10[%c0_23, %c0_24] : memref<1x128xf32, #tpu.memory_space<vmem>>, vector<1x128xf32>
    %36 = vector.broadcast %35 : vector<1x128xf32> to vector<16x128xf32>
    %37 = arith.addf %34, %36 : vector<16x128xf32>
    %c0_25 = arith.constant 0 : index
    %c0_26 = arith.constant 0 : index
    %38 = vector.load %arg11[%c0_25, %c0_26] : memref<128x128xbf16, #tpu.memory_space<vmem>>, vector<128x128xbf16>
    %cst_27 = arith.constant dense<0.000000e+00> : vector<16x128xf32>
    %39 = tpu.matmul %32, %38, %cst_27 {dimension_numbers = #tpu.dot_dimension_numbers<[1], [0], [0], [1], [0, 0, 1, 1], [], []>} : vector<16x128xbf16>, vector<128x128xbf16>, vector<16x128xf32> -> vector<16x128xf32>
    %c0_28 = arith.constant 0 : index
    %c0_29 = arith.constant 0 : index
    %40 = vector.load %arg12[%c0_28, %c0_29] : memref<1x128xf32, #tpu.memory_space<vmem>>, vector<1x128xf32>
    %41 = vector.broadcast %40 : vector<1x128xf32> to vector<16x128xf32>
    %42 = arith.addf %39, %41 : vector<16x128xf32>
    %c0_30 = arith.constant 0 : index
    %c0_31 = arith.constant 0 : index
    %43 = vector.load %arg13[%c0_30, %c0_31] : memref<16x512xf32, #tpu.memory_space<vmem>>, vector<16x128xf32>
    tpu.vector_store %arg13[%c0_30, %c0_31], %37 {strides = array<i32>} : memref<16x512xf32, #tpu.memory_space<vmem>>, vector<16x128xf32>,
    %c0_32 = arith.constant 0 : index
    %c128 = arith.constant 128 : index
    %44 = vector.load %arg13[%c0_32, %c128] : memref<16x512xf32, #tpu.memory_space<vmem>>, vector<16x128xf32>
    tpu.vector_store %arg13[%c0_32, %c128], %42 {strides = array<i32>} : memref<16x512xf32, #tpu.memory_space<vmem>>, vector<16x128xf32>,
    %c0_33 = arith.constant 0 : index
    %c256 = arith.constant 256 : index
    %45 = vector.load %arg13[%c0_33, %c256] : memref<16x512xf32, #tpu.memory_space<vmem>>, vector<16x128xf32>
    tpu.vector_store %arg13[%c0_33, %c256], %14 {strides = array<i32>} : memref<16x512xf32, #tpu.memory_space<vmem>>, vector<16x128xf32>,
    %c0_34 = arith.constant 0 : index
    %c384 = arith.constant 384 : index
    %46 = vector.load %arg13[%c0_34, %c384] : memref<16x512xf32, #tpu.memory_space<vmem>>, vector<16x128xf32>
    tpu.vector_store %arg13[%c0_34, %c384], %15 {strides = array<i32>} : memref<16x512xf32, #tpu.memory_space<vmem>>, vector<16x128xf32>,
    return
  }
  func.func @transform_0(%arg0: i32) -> (i32, i32) {
    %c0_i32 = arith.constant 0 : i32
    %c0_i32_0 = arith.constant 0 : i32
    return %arg0, %c0_i32 : i32, i32
  }
  func.func @transform_1(%arg0: i32) -> (i32, i32) {
    %c0_i32 = arith.constant 0 : i32
    %c0_i32_0 = arith.constant 0 : i32
    return %arg0, %c0_i32 : i32, i32
  }
  func.func @transform_2(%arg0: i32) -> (i32, i32) {
    %c0_i32 = arith.constant 0 : i32
    %c0_i32_0 = arith.constant 0 : i32
    %c0_i32_1 = arith.constant 0 : i32
    return %c0_i32, %c0_i32_0 : i32, i32
  }
  func.func @transform_3(%arg0: i32) -> (i32, i32) {
    %c0_i32 = arith.constant 0 : i32
    %c0_i32_0 = arith.constant 0 : i32
    %c0_i32_1 = arith.constant 0 : i32
    return %c0_i32, %c0_i32_0 : i32, i32
  }
  func.func @transform_4(%arg0: i32) -> (i32, i32) {
    %c0_i32 = arith.constant 0 : i32
    %c0_i32_0 = arith.constant 0 : i32
    %c0_i32_1 = arith.constant 0 : i32
    return %c0_i32, %c0_i32_0 : i32, i32
  }
  func.func @transform_5(%arg0: i32) -> (i32, i32) {
    %c0_i32 = arith.constant 0 : i32
    %c0_i32_0 = arith.constant 0 : i32
    %c0_i32_1 = arith.constant 0 : i32
    return %c0_i32, %c0_i32_0 : i32, i32
  }
  func.func @transform_6(%arg0: i32) -> (i32, i32) {
    %c0_i32 = arith.constant 0 : i32
    %c0_i32_0 = arith.constant 0 : i32
    %c0_i32_1 = arith.constant 0 : i32
    return %c0_i32, %c0_i32_0 : i32, i32
  }
  func.func @transform_7(%arg0: i32) -> (i32, i32) {
    %c0_i32 = arith.constant 0 : i32
    %c0_i32_0 = arith.constant 0 : i32
    %c0_i32_1 = arith.constant 0 : i32
    return %c0_i32, %c0_i32_0 : i32, i32
  }
  func.func @transform_8(%arg0: i32) -> (i32, i32) {
    %c0_i32 = arith.constant 0 : i32
    %c0_i32_0 = arith.constant 0 : i32
    %c0_i32_1 = arith.constant 0 : i32
    return %c0_i32, %c0_i32_0 : i32, i32
  }
  func.func @transform_9(%arg0: i32) -> (i32, i32) {
    %c0_i32 = arith.constant 0 : i32
    %c0_i32_0 = arith.constant 0 : i32
    %c0_i32_1 = arith.constant 0 : i32
    return %c0_i32, %c0_i32_0 : i32, i32
  }
  func.func @transform_10(%arg0: i32) -> (i32, i32) {
    %c0_i32 = arith.constant 0 : i32
    %c0_i32_0 = arith.constant 0 : i32
    %c0_i32_1 = arith.constant 0 : i32
    return %c0_i32, %c0_i32_0 : i32, i32
  }
  func.func @transform_11(%arg0: i32) -> (i32, i32) {
    %c0_i32 = arith.constant 0 : i32
    %c0_i32_0 = arith.constant 0 : i32
    %c0_i32_1 = arith.constant 0 : i32
    return %c0_i32, %c0_i32_0 : i32, i32
  }
  func.func @transform_12(%arg0: i32) -> (i32, i32) {
    %c0_i32 = arith.constant 0 : i32
    %c0_i32_0 = arith.constant 0 : i32
    return %arg0, %c0_i32 : i32, i32
  }
}

</mosaic_0001>

<bundles_post_ra>
// kernel: vae_forward.1
= control target key start
LH: loop header
LB: loop body
LE: loop exit
PB: predicated region body
PF: predicated region fallthrough
CT: control target
= control target key end

     0   :  { %17 = vsyncpa [#allocation3], 0  ;;  %s1244_s0 = inlined_call_operand.vmem [shape: bf16[16,128], index: 0, kind: input, shape index: {}]   ;;  %s1245_s1 = inlined_call_operand.vmem [shape: f32[16,128], index: 1, kind: input, shape index: {}]   ;;  %s1246_s2 = inlined_call_operand.hbm [shape: bf16[128,128], index: 2, kind: input, shape index: {}]   ;;  %s1247_s3 = inlined_call_operand.vmem [shape: f32[1,128], index: 3, kind: input, shape index: {}]   ;;  %s1248_s4 = inlined_call_operand.hbm [shape: bf16[128,256], index: 4, kind: input, shape index: {}]   ;;  %s1249_s5 = inlined_call_operand.vmem [shape: f32[1,256], index: 5, kind: input, shape index: {}]   ;;  %s1250_s6 = inlined_call_operand.hbm [shape: bf16[128,256], index: 6, kind: input, shape index: {}]   ;;  %s1251_s7 = inlined_call_operand.vmem [shape: f32[1,256], index: 7, kind: input, shape index: {}]   ;;  %s1252_s8 = inlined_call_operand.hbm [shape: bf16[128,128], index: 8, kind: input, shape index: {}]   ;;  %s1253_s9 = inlined_call_operand.vmem [shape: f32[1,128], index: 9, kind: input, shape index: {}]   ;;  %s1254_s10 = inlined_call_operand.hbm [shape: bf16[128,128], index: 10, kind: input, shape index: {}]   ;;  %s1255_s11 = inlined_call_operand.vmem [shape: f32[1,128], index: 11, kind: input, shape index: {}]   ;;  %s1256_s12 = inlined_call_operand.vmem [shape: f32[16,512], index: 12, kind: output, shape index: {}]  }
   0x1   :  { %18 = vsyncpa [#allocation5], 0  ;;  %s43_s23 = sshll.u32 %s1248_s4, 4  ;;  %s44_s23 = int_to_ptr.hbm [resolvable:$true] %s43_s23 }
   0x2   :  { %19 = vsyncpa [#allocation8], 0  ;;  %s1107_s24 = smov [#allocation4]   ;;  %s1108_s26 = smov 128  }
   0x3   :  { %s45_s25 = sshll.u32 %s1107_s24, 4  ;;  %s1109_s27 = smov 8   ;;  %s46_s25 = int_to_ptr.vmem [resolvable:$true] %s45_s25 }
   0x4   :  { %51 = dma.hbm_to_vmem [thread:$0]  %s44_s23, 2048, %s46_s25, [#allocation5], %s1108_s26, %s1108_s26, %s1109_s27  }
   0x5   :  { %s73_s30 = sshll.u32 %s1252_s8, 4  ;;  %s1110_s13 = smov [#allocation7]   ;;  %s74_s30 = int_to_ptr.hbm [resolvable:$true] %s73_s30 }
   0x6   :  { %s75_s14 = sshll.u32 %s1110_s13, 4  ;;  %s28_s17 = sshll.u32 %s1246_s2, 4  ;;  %s76_s14 = int_to_ptr.vmem [resolvable:$true] %s75_s14  ;;  %s29_s17 = int_to_ptr.hbm [resolvable:$true] %s28_s17 }
   0x7   :  { %s1111_s4 = smov 64   ;;  %s1112_s18 = smov 4  }
   0x8   :  { %81 = dma.hbm_to_vmem [thread:$0]  %s74_s30, 1024, %s76_s14, [#allocation8], %s1111_s4, %s1111_s4, %s1112_s18  }
   0x9   :  { %s58_s21 = sshll.u32 %s1250_s6, 4  ;;  %s1113_s22 = smov [#allocation2]   ;;  %s59_s21 = int_to_ptr.hbm [resolvable:$true] %s58_s21 }
   0xa   :  { %s30_s23 = sshll.u32 %s1113_s22, 4  ;;  %s1114_s8 = smov [#allocation6]   ;;  %s31_s23 = int_to_ptr.vmem [resolvable:$true] %s30_s23 }
   0xb   :  { %36 = dma.hbm_to_vmem [thread:$0]  %s29_s17, 1024, %s31_s23, [#allocation3], %s1111_s4, %s1111_s4, %s1112_s18  }
   0xc   :  { %s60_s24 = sshll.u32 %s1114_s8, 4  ;;  %s88_s2 = sshll.u32 %s1254_s10, 4  ;;  %s61_s24 = int_to_ptr.vmem [resolvable:$true] %s60_s24  ;;  %s89_s2 = int_to_ptr.hbm [resolvable:$true] %s88_s2 }
   0xd   :  { %66 = dma.hbm_to_vmem [thread:$0]  %s59_s21, 2048, %s61_s24, [#allocation5], %s1108_s26, %s1108_s26, %s1109_s27  }
   0xe   :  { %s1115_s29 = smov [#allocation9]  }
   0xf   :  { %s90_s30 = sshll.u32 %s1115_s29, 4  ;;  %s91_s30 = int_to_ptr.vmem [resolvable:$true] %s90_s30 }
  0x10   :  { %96 = dma.hbm_to_vmem [thread:$0]  %s89_s2, 1024, %s91_s30, [#allocation8], %s1111_s4, %s1111_s4, %s1112_s18  }
  0x11   :  { %1101 = dma.done.wait [#allocation3], 1024  }
  0x12   :  { %1102 = vsyncadd [#allocation3], 4294966272 }
  0x13   :  { %1103 = dma.done.wait [#allocation5], 4096  }
  0x14   :  { %1104 = vsyncadd [#allocation5], 4294963200 }
  0x15   :  { %1105 = dma.done.wait [#allocation8], 2048  }
  0x16   :  { %1106 = vsyncadd [#allocation8], 4294965248  ;;  %v916_v0 = vld [vmem:[#allocation2 + $0x38] sm:$0xff]  ;;  %v915_v1 = vld [vmem:[#allocation2 + $0x30] sm:$0xff] }
  0x17   :  { %195 = vmatpush.bf16.msra.mxu0 %v916_v0  ;;  %v774_v2 = vld [vmem:[#allocation4 + $0x70] sm:$0xf]  ;;  %v932_v3 = vld [vmem:[#allocation4 + $0x74] sm:$0xf0]  ;;  %v931_v4 = vld [vmem:[#allocation4 + $0x74] sm:$0xf] }
  0x18   :  { %v775_v5 = vor.u32 %v932_v3, %v774_v2  ;;  %v776_v6 = vld [vmem:[#allocation4 + $0x78] sm:$0xf0]  ;;  %v766_v7 = vld [vmem:[#allocation4 + $0x60] sm:$0xf]  ;;  %v930_v8 = vld [vmem:[#allocation4 + $0x64] sm:$0xf0] }
  0x19   :  { %v779_v9 = vor.u32 %v931_v4, %v776_v6  ;;  %v929_v10 = vld [vmem:[#allocation4 + $0x64] sm:$0xf]  ;;  %v768_v11 = vld [vmem:[#allocation4 + $0x68] sm:$0xf0]  ;;  %v767_v13 = vor.u32 %v930_v8, %v766_v7  ;;  %v758_v15 = vld [vmem:[#allocation4 + $0x50] sm:$0xf] }
  0x1a   :  { %v914_v12 = vld [vmem:[#allocation2 + $0x28] sm:$0xff]  ;;  %314 = vmatpush.bf16.msra.mxu1 %v775_v5  ;;  %v771_v14 = vor.u32 %v929_v10, %v768_v11  ;;  %v928_v16 = vld [vmem:[#allocation4 + $0x54] sm:$0xf0]  ;;  %v927_v17 = vld [vmem:[#allocation4 + $0x54] sm:$0xf] }
  0x1b   :  { %196 = vmatpush.bf16.msra.mxu0 %v915_v1  ;;  %328 = vmatpush.bf16.msra.mxu2 %v779_v9  ;;  %v760_v18 = vld [vmem:[#allocation4 + $0x58] sm:$0xf0]  ;;  %v913_v19 = vld [vmem:[#allocation2 + $0x20] sm:$0xff]  ;;  %v759_v20 = vor.u32 %v928_v16, %v758_v15  ;;  %v926_v23 = vld [vmem:[#allocation4 + $0x44] sm:$0xf0] }
  0x1c   :  { %v763_v21 = vor.u32 %v927_v17, %v760_v18  ;;  %v750_v22 = vld [vmem:[#allocation4 + $0x40] sm:$0xf]  ;;  %v925_v24 = vld [vmem:[#allocation4 + $0x44] sm:$0xf]  ;;  %v752_v25 = vld [vmem:[#allocation4 + $0x48] sm:$0xf0] }
  0x1d   :  { %v912_v26 = vld [vmem:[#allocation2 + $0x18] sm:$0xff]  ;;  %v751_v27 = vor.u32 %v926_v23, %v750_v22  ;;  %v755_v28 = vor.u32 %v925_v24, %v752_v25  ;;  %v911_v29 = vld [vmem:[#allocation2 + $0x10] sm:$0xff]  ;;  %v910_v30 = vld [vmem:[#allocation2 + $0x8] sm:$0xff] }
  0x1e   :  { %315 = vmatpush.bf16.msra.mxu1 %v767_v13  ;;  %v909_v31 = vld [vmem:[#allocation2] sm:$0xff]  ;;  %v742_v33 = vld [vmem:[#allocation4 + $0x30] sm:$0xf]  ;;  %v924_v34 = vld [vmem:[#allocation4 + $0x34] sm:$0xf0] }
  0x1f   :  { %197 = vmatpush.bf16.msra.mxu0 %v914_v12  ;;  %329 = vmatpush.bf16.msra.mxu2 %v771_v14  ;;  %v908_v32 = vld [vmem:[%s1244_s0] sm:$0xff]  ;;  %v923_v35 = vld [vmem:[#allocation4 + $0x34] sm:$0xf]  ;;  %v743_v36 = vor.u32 %v924_v34, %v742_v33  ;;  %v744_v37 = vld [vmem:[#allocation4 + $0x38] sm:$0xf0] }
  0x20   :  { %v747_v38 = vor.u32 %v923_v35, %v744_v37  ;;  %v734_v39 = vld [vmem:[#allocation4 + $0x20] sm:$0xf]  ;;  %v922_v40 = vld [vmem:[#allocation4 + $0x24] sm:$0xf0]  ;;  %v921_v41 = vld [vmem:[#allocation4 + $0x24] sm:$0xf] }
  0x21   :  { %v735_v42 = vor.u32 %v922_v40, %v734_v39  ;;  %v736_v43 = vld [vmem:[#allocation4 + $0x28] sm:$0xf0]  ;;  %v726_v45 = vld [vmem:[#allocation4 + $0x10] sm:$0xf]  ;;  %v920_v46 = vld [vmem:[#allocation4 + $0x14] sm:$0xf0] }
  0x22   :  { %316 = vmatpush.bf16.msra.mxu1 %v759_v20  ;;  %v739_v44 = vor.u32 %v921_v41, %v736_v43  ;;  %v919_v47 = vld [vmem:[#allocation4 + $0x14] sm:$0xf]  ;;  %v727_v48 = vor.u32 %v920_v46, %v726_v45  ;;  %v728_v49 = vld [vmem:[#allocation4 + $0x18] sm:$0xf0]  ;;  %v718_v51 = vld [vmem:[#allocation4] sm:$0xf] }
  0x23   :  { %198 = vmatpush.bf16.msra.mxu0 %v913_v19  ;;  %330 = vmatpush.bf16.msra.mxu2 %v763_v21  ;;  %v731_v50 = vor.u32 %v919_v47, %v728_v49  ;;  %v918_v52 = vld [vmem:[#allocation4 + $0x4] sm:$0xf0]  ;;  %v917_v53 = vld [vmem:[#allocation4 + $0x4] sm:$0xf]  ;;  %v720_v55 = vld [vmem:[#allocation4 + $0x8] sm:$0xf0] }
  0x24   :  { %v719_v54 = vor.u32 %v918_v52, %v718_v51  ;;  %v723_v56 = vor.u32 %v917_v53, %v720_v55  ;;  %v974_v58 = vld [vmem:[%s1247_s3] ss:$0 sm:$0xff]  ;;  %v838_v1 = vld [vmem:[#allocation6 + $0x70] sm:$0xf]  ;;  %v948_v2 = vld [vmem:[#allocation6 + $0x74] sm:$0xf0] }
  0x25   :  { %v947_v3 = vld [vmem:[#allocation6 + $0x74] sm:$0xf]  ;;  %v839_v4 = vor.u32 %v948_v2, %v838_v1  ;;  %v840_v5 = vld [vmem:[#allocation6 + $0x78] sm:$0xf0]  ;;  %v830_v7 = vld [vmem:[#allocation6 + $0x60] sm:$0xf] }
  0x26   :  { %317 = vmatpush.bf16.msra.mxu1 %v751_v27  ;;  %v843_v6 = vor.u32 %v947_v3, %v840_v5  ;;  %v946_v8 = vld [vmem:[#allocation6 + $0x64] sm:$0xf0]  ;;  %v945_v9 = vld [vmem:[#allocation6 + $0x64] sm:$0xf]  ;;  %v832_v11 = vld [vmem:[#allocation6 + $0x68] sm:$0xf0] }
  0x27   :  { %199 = vmatpush.bf16.msra.mxu0 %v912_v26  ;;  %331 = vmatpush.bf16.msra.mxu2 %v755_v28  ;;  %v831_v10 = vor.u32 %v946_v8, %v830_v7  ;;  %v835_v12 = vor.u32 %v945_v9, %v832_v11  ;;  %v822_v13 = vld [vmem:[#allocation6 + $0x50] sm:$0xf]  ;;  %v944_v14 = vld [vmem:[#allocation6 + $0x54] sm:$0xf0]  ;;  %v943_v15 = vld [vmem:[#allocation6 + $0x54] sm:$0xf] }
  0x28   :  { %457 = vmatpush.bf16.msra.mxu3 %v839_v4  ;;  %v823_v16 = vor.u32 %v944_v14, %v822_v13  ;;  %v824_v17 = vld [vmem:[#allocation6 + $0x58] sm:$0xf0]  ;;  %v814_v19 = vld [vmem:[#allocation6 + $0x40] sm:$0xf]  ;;  %v942_v20 = vld [vmem:[#allocation6 + $0x44] sm:$0xf0] }
  0x29   :  { %v827_v18 = vor.u32 %v943_v15, %v824_v17  ;;  %v941_v21 = vld [vmem:[#allocation6 + $0x44] sm:$0xf]  ;;  %v815_v22 = vor.u32 %v942_v20, %v814_v19  ;;  %v816_v23 = vld [vmem:[#allocation6 + $0x48] sm:$0xf0]  ;;  %v806_v25 = vld [vmem:[#allocation6 + $0x30] sm:$0xf] }
  0x2a   :  { %318 = vmatpush.bf16.msra.mxu1 %v743_v36  ;;  %v819_v24 = vor.u32 %v941_v21, %v816_v23  ;;  %v940_v26 = vld [vmem:[#allocation6 + $0x34] sm:$0xf0]  ;;  %v939_v27 = vld [vmem:[#allocation6 + $0x34] sm:$0xf]  ;;  %v937_v33 = vld [vmem:[#allocation6 + $0x24] sm:$0xf] }
  0x2b   :  { %200 = vmatpush.bf16.msra.mxu0 %v911_v29  ;;  %332 = vmatpush.bf16.msra.mxu2 %v747_v38  ;;  %v807_v28 = vor.u32 %v940_v26, %v806_v25  ;;  %v808_v29 = vld [vmem:[#allocation6 + $0x38] sm:$0xf0]  ;;  %v800_v35 = vld [vmem:[#allocation6 + $0x28] sm:$0xf0]  ;;  %v790_v36 = vld [vmem:[#allocation6 + $0x10] sm:$0xf] }
  0x2c   :  { %458 = vmatpush.bf16.msra.mxu3 %v831_v10  ;;  %v936_v37 = vld [vmem:[#allocation6 + $0x14] sm:$0xf0]  ;;  %v803_v38 = vor.u32 %v937_v33, %v800_v35  ;;  %v935_v39 = vld [vmem:[#allocation6 + $0x14] sm:$0xf]  ;;  %v792_v40 = vld [vmem:[#allocation6 + $0x18] sm:$0xf0] }
  0x2d   :  { %v791_v41 = vor.u32 %v936_v37, %v790_v36  ;;  %v782_v43 = vld [vmem:[#allocation6] sm:$0xf]  ;;  %v933_v45 = vld [vmem:[#allocation6 + $0x4] sm:$0xf]  ;;  %v784_v46 = vld [vmem:[#allocation6 + $0x8] sm:$0xf0] }
  0x2e   :  { %319 = vmatpush.bf16.msra.mxu1 %v735_v42  ;;  %v795_v42 = vor.u32 %v935_v39, %v792_v40  ;;  %v228_v47 = vld [vmem:[%s1249_s5] sm:$0x3]  ;;  %v787_v49 = vor.u32 %v933_v45, %v784_v46  ;;  %v956_v53 = vld [vmem:[#allocation7 + $0x38] sm:$0xff]  ;;  %v954_v13 = vld [vmem:[#allocation7 + $0x28] sm:$0xff] }
  0x2f   :  { %201 = vmatpush.bf16.msra.mxu0 %v910_v30  ;;  %333 = vmatpush.bf16.msra.mxu2 %v739_v44  ;;  %v811_v30 = vor.u32 %v939_v27, %v808_v29  ;;  %v934_v44 = vld [vmem:[#allocation6 + $0x4] sm:$0xf0]  ;;  %v231_v55 = vperm.slane %v228_v47, 1  ;;  %v342_v5 = vld [vmem:[%s1245_s1] sm:$0xff]  ;;  %v952_v17 = vld [vmem:[#allocation7 + $0x18] sm:$0xff] }
  0x30   :  { %459 = vmatpush.bf16.msra.mxu3 %v823_v16  ;;  %v962_v14 = vld [vmem:[#allocation9 + $0x28] sm:$0xff]  ;;  %v953_v15 = vld [vmem:[#allocation7 + $0x20] sm:$0xff]  ;;  %v951_v19 = vld [vmem:[#allocation7 + $0x10] sm:$0xff] }
  0x31   :  { %v961_v16 = vld [vmem:[#allocation9 + $0x20] sm:$0xff]  ;;  %v959_v20 = vld [vmem:[#allocation9 + $0x10] sm:$0xff]  ;;  %v950_v21 = vld [vmem:[#allocation7 + $0x8] sm:$0xff] }
  0x32   :  { %320 = vmatpush.bf16.msra.mxu1 %v727_v48  ;;  %v783_v48 = vor.u32 %v934_v44, %v782_v43  ;;  %v949_v23 = vld [vmem:[#allocation7] sm:$0xff] }
  0x33   :  { %202 = vmatpush.bf16.msra.mxu0 %v909_v31  ;;  %334 = vmatpush.bf16.msra.mxu2 %v731_v50  ;;  %v798_v31 = vld [vmem:[#allocation6 + $0x20] sm:$0xf]  ;;  %v230_v50 = vperm.slane %v228_v47, 0 }
  0x34   :  { %460 = vmatpush.bf16.msra.mxu3 %v815_v22  ;;  %v958_v22 = vld [vmem:[#allocation9 + $0x8] sm:$0xff]  ;;  %v371_v26 = vld [vmem:[%s1251_s7] sm:$0x3] }
  0x35   :  { %v373_v27 = vperm.slane %v371_v26, 0  ;;  %v374_v29 = vperm.slane %v371_v26, 1 }
  0x36   :  { %203 = vmatmul.bf16.vlgmr.msra.gmra.mxu0 %v908_v32  ;;  %321 = vmatpush.bf16.msra.mxu1 %v719_v54  ;;  %v938_v32 = vld [vmem:[#allocation6 + $0x24] sm:$0xf0]  ;;  %v964_v54 = vld [vmem:[#allocation9 + $0x38] sm:$0xff] }
  0x37   :  { %335 = vmatpush.bf16.msra.mxu2 %v723_v56  ;;  %471 = vmatpush.bf16.msrb.mxu0 %v843_v6  ;;  %v799_v34 = vor.u32 %v938_v32, %v798_v31  ;;  %v955_v56 = vld [vmem:[#allocation7 + $0x30] sm:$0xff]  ;;  %v343_v6 = vld [vmem:[%s1245_s1 + $0x8] sm:$0xff] }
  0x38   :  { %461 = vmatpush.bf16.msra.mxu3 %v807_v28 }
  0x3a   :  { %565 = vmatpush.bf16.msrb.mxu1 %v956_v53 }
  0x3b   :  { %472 = vmatpush.bf16.msrb.mxu0 %v835_v12  ;;  %651 = vmatpush.bf16.msrb.mxu2 %v964_v54 }
  0x3c   :  { %462 = vmatpush.bf16.msra.mxu3 %v799_v34 }
  0x3e   :  { %566 = vmatpush.bf16.msrb.mxu1 %v955_v56 }
  0x3f   :  { %473 = vmatpush.bf16.msrb.mxu0 %v827_v18  ;;  %v960_v18 = vld [vmem:[#allocation9 + $0x18] sm:$0xff] }
  0x40   :  { %463 = vmatpush.bf16.msra.mxu3 %v791_v41 }
  0x42   :  { %567 = vmatpush.bf16.msrb.mxu1 %v954_v13 }
  0x43   :  { %474 = vmatpush.bf16.msrb.mxu0 %v819_v24  ;;  %v957_v24 = vld [vmem:[#allocation9] sm:$0xff] }
  0x44   :  { %464 = vmatpush.bf16.msra.mxu3 %v783_v48  ;;  %v975_v48 = vld [vmem:[%s1253_s9] ss:$0 sm:$0xff] }
  0x46   :  { %568 = vmatpush.bf16.msrb.mxu1 %v953_v15 }
  0x47   :  { %475 = vmatpush.bf16.msrb.mxu0 %v811_v30 }
  0x4a   :  { %569 = vmatpush.bf16.msrb.mxu1 %v952_v17 }
  0x4b   :  { %476 = vmatpush.bf16.msrb.mxu0 %v803_v38 }
  0x4e   :  { %570 = vmatpush.bf16.msrb.mxu1 %v951_v19 }
  0x4f   :  { %477 = vmatpush.bf16.msrb.mxu0 %v795_v42 }
  0x52   :  { %571 = vmatpush.bf16.msrb.mxu1 %v950_v21 }
  0x53   :  { %478 = vmatpush.bf16.msrb.mxu0 %v787_v49 }
  0x56   :  { %572 = vmatpush.bf16.msrb.mxu1 %v949_v23 }
  0xb3   :  { %v204_v57 = vpop.f32.mrf.mxu0 }
  0xb4   :  { %v205_v59 = vadd.f32 %v974_v58, %v204_v57  ;;  %v963_v57 = vld [vmem:[#allocation9 + $0x30] sm:$0xff] }
  0xb5   :  { %652 = vmatpush.bf16.msrb.mxu2 %v963_v57 }
  0xb6   :  { %v209_v62 = vmax.f32 %v205_v59, 0.0 }
  0xb9   :  { %653 = vmatpush.bf16.msrb.mxu2 %v962_v14 }
  0xbb   :  { %v206_v60 = vpop.f32.mrf.mxu0 }
  0xbc   :  { %v207_v61 = vadd.f32 %v974_v58, %v206_v60 }
  0xbd   :  { %654 = vmatpush.bf16.msrb.mxu2 %v961_v16 }
  0xbe   :  { %v210_v63 = vmax.f32 %v207_v61, 0.0 }
  0xc0   :  { %v211_v0 = vpack.c.bf16 %v210_v63, %v209_v62 }
  0xc1   :  { %655 = vmatpush.bf16.msrb.mxu2 %v960_v18 }
  0xc2   :  { %322 = vmatmul.bf16.vlgmr.msra.gmra.mxu1 %v211_v0  ;;  %336 = vmatmul.bf16.vlgmr.msra.gmra.mxu2 %v211_v0 }
  0xc5   :  { %656 = vmatpush.bf16.msrb.mxu2 %v959_v20 }
  0xc9   :  { %657 = vmatpush.bf16.msrb.mxu2 %v958_v22 }
  0xcd   :  { %658 = vmatpush.bf16.msrb.mxu2 %v957_v24 }
 0x13f   :  { %v323_v51 = vpop.f32.mrf.mxu1 }
 0x140   :  { %v324_v52 = vadd.f32 %v323_v51, %v230_v50  ;;  %v976_v51 = vld [vmem:[%s1255_s11] ss:$0 sm:$0xff] }
 0x142   :  { %669 = vst [vmem:[%s1256_s12 + $0x10] sm:$0xff] %v324_v52 }
 0x145   :  { %v337_v58 = vpop.f32.mrf.mxu2 }
 0x146   :  { %v338_v59 = vadd.f32 %v337_v58, %v231_v55 }
 0x147   :  { %v325_v60 = vpop.f32.mrf.mxu1 }
 0x148   :  { %v344_v61 = vmul.f32 0.5, %v338_v59  ;;  %671 = vst [vmem:[%s1256_s12 + $0x18] sm:$0xff] %v338_v59  ;;  %v326_v62 = vadd.f32 %v325_v60, %v230_v50 }
 0x14a   :  { %670 = vst [vmem:[%s1256_s12 + $0x30] sm:$0xff] %v326_v62  ;;  %v346_v63 = vmul.f32 1.442695, %v344_v61 }
 0x14c   :  { %977 = vpow2.f32 %v346_v63 }
 0x14d   :  { %v339_v0 = vpop.f32.mrf.mxu2 }
 0x14e   :  { %v340_v1 = vadd.f32 %v339_v0, %v231_v55 }
 0x150   :  { %v345_v2 = vmul.f32 0.5, %v340_v1  ;;  %672 = vst [vmem:[%s1256_s12 + $0x38] sm:$0xff] %v340_v1 }
 0x152   :  { %v348_v3 = vmul.f32 1.442695, %v345_v2  ;;  %v978_v4 = vpop.eup %977 }
 0x153   :  { %v350_v7 = vmul.f32 %v978_v4, %v342_v5 }
 0x154   :  { %979 = vpow2.f32 %v348_v3 }
 0x155   :  { %v352_v10 = vadd.f32 %v350_v7, %v324_v52 }
 0x15a   :  { %v980_v8 = vpop.eup %979 }
 0x15b   :  { %v351_v9 = vmul.f32 %v980_v8, %v343_v6 }
 0x15d   :  { %v353_v11 = vadd.f32 %v351_v9, %v326_v62 }
 0x15f   :  { %v354_v12 = vpack.c.bf16 %v353_v11, %v352_v10 }
 0x161   :  { %465 = vmatmul.bf16.vlgmr.msra.gmra.mxu3 %v354_v12  ;;  %479 = vmatmul.bf16.vlgmr.msrb.gmra.mxu0 %v354_v12 }
 0x1de   :  { %v480_v25 = vpop.f32.mrf.mxu0 }
 0x1df   :  { %v481_v32 = vadd.f32 %v480_v25, %v374_v29 }
 0x1e1   :  { %v486_v36 = vmax.f32 %v481_v32, 0.0 }
 0x1e4   :  { %v466_v28 = vpop.f32.mrf.mxu3 }
 0x1e5   :  { %v467_v30 = vadd.f32 %v466_v28, %v373_v27 }
 0x1e6   :  { %v482_v31 = vpop.f32.mrf.mxu0 }
 0x1e7   :  { %v485_v33 = vmax.f32 %v467_v30, 0.0  ;;  %v483_v34 = vadd.f32 %v482_v31, %v374_v29 }
 0x1e9   :  { %v489_v38 = vpack.c.bf16 %v486_v36, %v485_v33  ;;  %v488_v39 = vmax.f32 %v483_v34, 0.0 }
 0x1eb   :  { %v513_v42 = vunpack.c.l.b16 %v489_v38  ;;  %v599_v43 = vunpack.c.h.b16 %v489_v38 }
 0x1ec   :  { %v468_v35 = vpop.f32.mrf.mxu3 }
 0x1ed   :  { %v469_v37 = vadd.f32 %v468_v35, %v373_v27 }
 0x1ef   :  { %v487_v40 = vmax.f32 %v469_v37, 0.0 }
 0x1f1   :  { %v490_v41 = vpack.c.bf16 %v488_v39, %v487_v40 }
 0x1f3   :  { %v514_v44 = vunpack.c.l.b16 %v490_v41  ;;  %v600_v45 = vunpack.c.h.b16 %v490_v41 }
 0x1f5   :  { %v515_v46 = vpack.c.b16 %v514_v44, %v513_v42  ;;  %v601_v47 = vpack.c.b16 %v600_v45, %v599_v43 }
 0x1f7   :  { %573 = vmatmul.bf16.vlgmr.msrb.gmra.mxu1 %v515_v46  ;;  %659 = vmatmul.bf16.vlgmr.msrb.gmra.mxu2 %v601_v47 }
 0x274   :  { %v574_v49 = vpop.f32.mrf.mxu1 }
 0x275   :  { %v575_v50 = vadd.f32 %v975_v48, %v574_v49 }
 0x277   :  { %665 = vst [vmem:[%s1256_s12] sm:$0xff] %v575_v50 }
 0x27a   :  { %v660_v52 = vpop.f32.mrf.mxu2 }
 0x27b   :  { %v661_v53 = vadd.f32 %v976_v51, %v660_v52 }
 0x27c   :  { %v576_v54 = vpop.f32.mrf.mxu1 }
 0x27d   :  { %667 = vst [vmem:[%s1256_s12 + $0x8] sm:$0xff] %v661_v53  ;;  %v577_v55 = vadd.f32 %v975_v48, %v576_v54 }
 0x27f   :  { %666 = vst [vmem:[%s1256_s12 + $0x20] sm:$0xff] %v577_v55 }
 0x282   :  { %v662_v56 = vpop.f32.mrf.mxu2 }
 0x283   :  { %v663_v57 = vadd.f32 %v976_v51, %v662_v56 }
 0x285   :  { %668 = vst [vmem:[%s1256_s12 + $0x28] sm:$0xff] %v663_v57 }
 0x286   :  { %677 = vsyncpa [#allocation3], 1 }
 0x287   :  { %678 = vsyncpa [#allocation5], 1 }
 0x288   :  { %679 = vsyncpa [#allocation8], 1 }

// kernel: vae_forward.1
= control target key start
LH: loop header
LB: loop body
LE: loop exit
PB: predicated region body
PF: predicated region fallthrough
CT: control target
= control target key end

     0   :  { %17 = vsyncpa [#allocation3], 0  ;;  %s1244_s0 = inlined_call_operand.vmem [shape: bf16[16,128], index: 0, kind: input, shape index: {}]   ;;  %s1245_s1 = inlined_call_operand.vmem [shape: f32[16,128], index: 1, kind: input, shape index: {}]   ;;  %s1246_s2 = inlined_call_operand.hbm [shape: bf16[128,128], index: 2, kind: input, shape index: {}]   ;;  %s1247_s3 = inlined_call_operand.vmem [shape: f32[1,128], index: 3, kind: input, shape index: {}]   ;;  %s1248_s4 = inlined_call_operand.hbm [shape: bf16[128,256], index: 4, kind: input, shape index: {}]   ;;  %s1249_s5 = inlined_call_operand.vmem [shape: f32[1,256], index: 5, kind: input, shape index: {}]   ;;  %s1250_s6 = inlined_call_operand.hbm [shape: bf16[128,256], index: 6, kind: input, shape index: {}]   ;;  %s1251_s7 = inlined_call_operand.vmem [shape: f32[1,256], index: 7, kind: input, shape index: {}]   ;;  %s1252_s8 = inlined_call_operand.hbm [shape: bf16[128,128], index: 8, kind: input, shape index: {}]   ;;  %s1253_s9 = inlined_call_operand.vmem [shape: f32[1,128], index: 9, kind: input, shape index: {}]   ;;  %s1254_s10 = inlined_call_operand.hbm [shape: bf16[128,128], index: 10, kind: input, shape index: {}]   ;;  %s1255_s11 = inlined_call_operand.vmem [shape: f32[1,128], index: 11, kind: input, shape index: {}]   ;;  %s1256_s12 = inlined_call_operand.vmem [shape: f32[16,512], index: 12, kind: output, shape index: {}]  }
   0x1   :  { %18 = vsyncpa [#allocation5], 0  ;;  %s43_s23 = sshll.u32 %s1248_s4, 4  ;;  %s44_s23 = int_to_ptr.hbm [resolvable:$true] %s43_s23 }
   0x2   :  { %19 = vsyncpa [#allocation8], 0  ;;  %s1107_s24 = smov [#allocation4]   ;;  %s1108_s26 = smov 128  }
   0x3   :  { %s45_s25 = sshll.u32 %s1107_s24, 4  ;;  %s1109_s27 = smov 8   ;;  %s46_s25 = int_to_ptr.vmem [resolvable:$true] %s45_s25 }
   0x4   :  { %51 = dma.hbm_to_vmem [thread:$0]  %s44_s23, 2048, %s46_s25, [#allocation5], %s1108_s26, %s1108_s26, %s1109_s27  }
   0x5   :  { %s73_s30 = sshll.u32 %s1252_s8, 4  ;;  %s1110_s13 = smov [#allocation7]   ;;  %s74_s30 = int_to_ptr.hbm [resolvable:$true] %s73_s30 }
   0x6   :  { %s75_s14 = sshll.u32 %s1110_s13, 4  ;;  %s28_s17 = sshll.u32 %s1246_s2, 4  ;;  %s76_s14 = int_to_ptr.vmem [resolvable:$true] %s75_s14  ;;  %s29_s17 = int_to_ptr.hbm [resolvable:$true] %s28_s17 }
   0x7   :  { %s1111_s4 = smov 64   ;;  %s1112_s18 = smov 4  }
   0x8   :  { %81 = dma.hbm_to_vmem [thread:$0]  %s74_s30, 1024, %s76_s14, [#allocation8], %s1111_s4, %s1111_s4, %s1112_s18  }
   0x9   :  { %s58_s21 = sshll.u32 %s1250_s6, 4  ;;  %s1113_s22 = smov [#allocation2]   ;;  %s59_s21 = int_to_ptr.hbm [resolvable:$true] %s58_s21 }
   0xa   :  { %s30_s23 = sshll.u32 %s1113_s22, 4  ;;  %s1114_s8 = smov [#allocation6]   ;;  %s31_s23 = int_to_ptr.vmem [resolvable:$true] %s30_s23 }
   0xb   :  { %36 = dma.hbm_to_vmem [thread:$0]  %s29_s17, 1024, %s31_s23, [#allocation3], %s1111_s4, %s1111_s4, %s1112_s18  }
   0xc   :  { %s60_s24 = sshll.u32 %s1114_s8, 4  ;;  %s88_s2 = sshll.u32 %s1254_s10, 4  ;;  %s61_s24 = int_to_ptr.vmem [resolvable:$true] %s60_s24  ;;  %s89_s2 = int_to_ptr.hbm [resolvable:$true] %s88_s2 }
   0xd   :  { %66 = dma.hbm_to_vmem [thread:$0]  %s59_s21, 2048, %s61_s24, [#allocation5], %s1108_s26, %s1108_s26, %s1109_s27  }
   0xe   :  { %s1115_s29 = smov [#allocation9]  }
   0xf   :  { %s90_s30 = sshll.u32 %s1115_s29, 4  ;;  %s91_s30 = int_to_ptr.vmem [resolvable:$true] %s90_s30 }
  0x10   :  { %96 = dma.hbm_to_vmem [thread:$0]  %s89_s2, 1024, %s91_s30, [#allocation8], %s1111_s4, %s1111_s4, %s1112_s18  }
  0x11   :  { %1101 = dma.done.wait [#allocation3], 1024  }
  0x12   :  { %1102 = vsyncadd [#allocation3], 4294966272 }
  0x13   :  { %1103 = dma.done.wait [#allocation5], 4096  }
  0x14   :  { %1104 = vsyncadd [#allocation5], 4294963200 }
  0x15   :  { %1105 = dma.done.wait [#allocation8], 2048  }
  0x16   :  { %1106 = vsyncadd [#allocation8], 4294965248  ;;  %v916_v0 = vld [vmem:[#allocation2 + $0x38] sm:$0xff]  ;;  %v915_v1 = vld [vmem:[#allocation2 + $0x30] sm:$0xff] }
  0x17   :  { %195 = vmatpush.bf16.msra.mxu0 %v916_v0  ;;  %v774_v2 = vld [vmem:[#allocation4 + $0x70] sm:$0xf]  ;;  %v932_v3 = vld [vmem:[#allocation4 + $0x74] sm:$0xf0]  ;;  %v931_v4 = vld [vmem:[#allocation4 + $0x74] sm:$0xf] }
  0x18   :  { %v775_v5 = vor.u32 %v932_v3, %v774_v2  ;;  %v776_v6 = vld [vmem:[#allocation4 + $0x78] sm:$0xf0]  ;;  %v766_v7 = vld [vmem:[#allocation4 + $0x60] sm:$0xf]  ;;  %v930_v8 = vld [vmem:[#allocation4 + $0x64] sm:$0xf0] }
  0x19   :  { %v779_v9 = vor.u32 %v931_v4, %v776_v6  ;;  %v929_v10 = vld [vmem:[#allocation4 + $0x64] sm:$0xf]  ;;  %v768_v11 = vld [vmem:[#allocation4 + $0x68] sm:$0xf0]  ;;  %v767_v13 = vor.u32 %v930_v8, %v766_v7  ;;  %v758_v15 = vld [vmem:[#allocation4 + $0x50] sm:$0xf] }
  0x1a   :  { %v914_v12 = vld [vmem:[#allocation2 + $0x28] sm:$0xff]  ;;  %314 = vmatpush.bf16.msra.mxu1 %v775_v5  ;;  %v771_v14 = vor.u32 %v929_v10, %v768_v11  ;;  %v928_v16 = vld [vmem:[#allocation4 + $0x54] sm:$0xf0]  ;;  %v927_v17 = vld [vmem:[#allocation4 + $0x54] sm:$0xf] }
  0x1b   :  { %196 = vmatpush.bf16.msra.mxu0 %v915_v1  ;;  %328 = vmatpush.bf16.msra.mxu2 %v779_v9  ;;  %v760_v18 = vld [vmem:[#allocation4 + $0x58] sm:$0xf0]  ;;  %v913_v19 = vld [vmem:[#allocation2 + $0x20] sm:$0xff]  ;;  %v759_v20 = vor.u32 %v928_v16, %v758_v15  ;;  %v926_v23 = vld [vmem:[#allocation4 + $0x44] sm:$0xf0] }
  0x1c   :  { %v763_v21 = vor.u32 %v927_v17, %v760_v18  ;;  %v750_v22 = vld [vmem:[#allocation4 + $0x40] sm:$0xf]  ;;  %v925_v24 = vld [vmem:[#allocation4 + $0x44] sm:$0xf]  ;;  %v752_v25 = vld [vmem:[#allocation4 + $0x48] sm:$0xf0] }
  0x1d   :  { %v912_v26 = vld [vmem:[#allocation2 + $0x18] sm:$0xff]  ;;  %v751_v27 = vor.u32 %v926_v23, %v750_v22  ;;  %v755_v28 = vor.u32 %v925_v24, %v752_v25  ;;  %v911_v29 = vld [vmem:[#allocation2 + $0x10] sm:$0xff]  ;;  %v910_v30 = vld [vmem:[#allocation2 + $0x8] sm:$0xff] }
  0x1e   :  { %315 = vmatpush.bf16.msra.mxu1 %v767_v13  ;;  %v909_v31 = vld [vmem:[#allocation2] sm:$0xff]  ;;  %v742_v33 = vld [vmem:[#allocation4 + $0x30] sm:$0xf]  ;;  %v924_v34 = vld [vmem:[#allocation4 + $0x34] sm:$0xf0] }
  0x1f   :  { %197 = vmatpush.bf16.msra.mxu0 %v914_v12  ;;  %329 = vmatpush.bf16.msra.mxu2 %v771_v14  ;;  %v908_v32 = vld [vmem:[%s1244_s0] sm:$0xff]  ;;  %v923_v35 = vld [vmem:[#allocation4 + $0x34] sm:$0xf]  ;;  %v743_v36 = vor.u32 %v924_v34, %v742_v33  ;;  %v744_v37 = vld [vmem:[#allocation4 + $0x38] sm:$0xf0] }
  0x20   :  { %v747_v38 = vor.u32 %v923_v35, %v744_v37  ;;  %v734_v39 = vld [vmem:[#allocation4 + $0x20] sm:$0xf]  ;;  %v922_v40 = vld [vmem:[#allocation4 + $0x24] sm:$0xf0]  ;;  %v921_v41 = vld [vmem:[#allocation4 + $0x24] sm:$0xf] }
  0x21   :  { %v735_v42 = vor.u32 %v922_v40, %v734_v39  ;;  %v736_v43 = vld [vmem:[#allocation4 + $0x28] sm:$0xf0]  ;;  %v726_v45 = vld [vmem:[#allocation4 + $0x10] sm:$0xf]  ;;  %v920_v46 = vld [vmem:[#allocation4 + $0x14] sm:$0xf0] }
  0x22   :  { %316 = vmatpush.bf16.msra.mxu1 %v759_v20  ;;  %v739_v44 = vor.u32 %v921_v41, %v736_v43  ;;  %v919_v47 = vld [vmem:[#allocation4 + $0x14] sm:$0xf]  ;;  %v727_v48 = vor.u32 %v920_v46, %v726_v45  ;;  %v728_v49 = vld [vmem:[#allocation4 + $0x18] sm:$0xf0]  ;;  %v718_v51 = vld [vmem:[#allocation4] sm:$0xf] }
  0x23   :  { %198 = vmatpush.bf16.msra.mxu0 %v913_v19  ;;  %330 = vmatpush.bf16.msra.mxu2 %v763_v21  ;;  %v731_v50 = vor.u32 %v919_v47, %v728_v49  ;;  %v918_v52 = vld [vmem:[#allocation4 + $0x4] sm:$0xf0]  ;;  %v917_v53 = vld [vmem:[#allocation4 + $0x4] sm:$0xf]  ;;  %v720_v55 = vld [vmem:[#allocation4 + $0x8] sm:$0xf0] }
  0x24   :  { %v719_v54 = vor.u32 %v918_v52, %v718_v51  ;;  %v723_v56 = vor.u32 %v917_v53, %v720_v55  ;;  %v974_v58 = vld [vmem:[%s1247_s3] ss:$0 sm:$0xff]  ;;  %v838_v1 = vld [vmem:[#allocation6 + $0x70] sm:$0xf]  ;;  %v948_v2 = vld [vmem:[#allocation6 + $0x74] sm:$0xf0] }
  0x25   :  { %v947_v3 = vld [vmem:[#allocation6 + $0x74] sm:$0xf]  ;;  %v839_v4 = vor.u32 %v948_v2, %v838_v1  ;;  %v840_v5 = vld [vmem:[#allocation6 + $0x78] sm:$0xf0]  ;;  %v830_v7 = vld [vmem:[#allocation6 + $0x60] sm:$0xf] }
  0x26   :  { %317 = vmatpush.bf16.msra.mxu1 %v751_v27  ;;  %v843_v6 = vor.u32 %v947_v3, %v840_v5  ;;  %v946_v8 = vld [vmem:[#allocation6 + $0x64] sm:$0xf0]  ;;  %v945_v9 = vld [vmem:[#allocation6 + $0x64] sm:$0xf]  ;;  %v832_v11 = vld [vmem:[#allocation6 + $0x68] sm:$0xf0] }
  0x27   :  { %199 = vmatpush.bf16.msra.mxu0 %v912_v26  ;;  %331 = vmatpush.bf16.msra.mxu2 %v755_v28  ;;  %v831_v10 = vor.u32 %v946_v8, %v830_v7  ;;  %v835_v12 = vor.u32 %v945_v9, %v832_v11  ;;  %v822_v13 = vld [vmem:[#allocation6 + $0x50] sm:$0xf]  ;;  %v944_v14 = vld [vmem:[#allocation6 + $0x54] sm:$0xf0]  ;;  %v943_v15 = vld [vmem:[#allocation6 + $0x54] sm:$0xf] }
  0x28   :  { %457 = vmatpush.bf16.msra.mxu3 %v839_v4  ;;  %v823_v16 = vor.u32 %v944_v14, %v822_v13  ;;  %v824_v17 = vld [vmem:[#allocation6 + $0x58] sm:$0xf0]  ;;  %v814_v19 = vld [vmem:[#allocation6 + $0x40] sm:$0xf]  ;;  %v942_v20 = vld [vmem:[#allocation6 + $0x44] sm:$0xf0] }
  0x29   :  { %v827_v18 = vor.u32 %v943_v15, %v824_v17  ;;  %v941_v21 = vld [vmem:[#allocation6 + $0x44] sm:$0xf]  ;;  %v815_v22 = vor.u32 %v942_v20, %v814_v19  ;;  %v816_v23 = vld [vmem:[#allocation6 + $0x48] sm:$0xf0]  ;;  %v806_v25 = vld [vmem:[#allocation6 + $0x30] sm:$0xf] }
  0x2a   :  { %318 = vmatpush.bf16.msra.mxu1 %v743_v36  ;;  %v819_v24 = vor.u32 %v941_v21, %v816_v23  ;;  %v940_v26 = vld [vmem:[#allocation6 + $0x34] sm:$0xf0]  ;;  %v939_v27 = vld [vmem:[#allocation6 + $0x34] sm:$0xf]  ;;  %v937_v33 = vld [vmem:[#allocation6 + $0x24] sm:$0xf] }
  0x2b   :  { %200 = vmatpush.bf16.msra.mxu0 %v911_v29  ;;  %332 = vmatpush.bf16.msra.mxu2 %v747_v38  ;;  %v807_v28 = vor.u32 %v940_v26, %v806_v25  ;;  %v808_v29 = vld [vmem:[#allocation6 + $0x38] sm:$0xf0]  ;;  %v800_v35 = vld [vmem:[#allocation6 + $0x28] sm:$0xf0]  ;;  %v790_v36 = vld [vmem:[#allocation6 + $0x10] sm:$0xf] }
  0x2c   :  { %458 = vmatpush.bf16.msra.mxu3 %v831_v10  ;;  %v936_v37 = vld [vmem:[#allocation6 + $0x14] sm:$0xf0]  ;;  %v803_v38 = vor.u32 %v937_v33, %v800_v35  ;;  %v935_v39 = vld [vmem:[#allocation6 + $0x14] sm:$0xf]  ;;  %v792_v40 = vld [vmem:[#allocation6 + $0x18] sm:$0xf0] }
  0x2d   :  { %v791_v41 = vor.u32 %v936_v37, %v790_v36  ;;  %v782_v43 = vld [vmem:[#allocation6] sm:$0xf]  ;;  %v933_v45 = vld [vmem:[#allocation6 + $0x4] sm:$0xf]  ;;  %v784_v46 = vld [vmem:[#allocation6 + $0x8] sm:$0xf0] }
  0x2e   :  { %319 = vmatpush.bf16.msra.mxu1 %v735_v42  ;;  %v795_v42 = vor.u32 %v935_v39, %v792_v40  ;;  %v228_v47 = vld [vmem:[%s1249_s5] sm:$0x3]  ;;  %v787_v49 = vor.u32 %v933_v45, %v784_v46  ;;  %v956_v53 = vld [vmem:[#allocation7 + $0x38] sm:$0xff]  ;;  %v954_v13 = vld [vmem:[#allocation7 + $0x28] sm:$0xff] }
  0x2f   :  { %201 = vmatpush.bf16.msra.mxu0 %v910_v30  ;;  %333 = vmatpush.bf16.msra.mxu2 %v739_v44  ;;  %v811_v30 = vor.u32 %v939_v27, %v808_v29  ;;  %v934_v44 = vld [vmem:[#allocation6 + $0x4] sm:$0xf0]  ;;  %v231_v55 = vperm.slane %v228_v47, 1  ;;  %v342_v5 = vld [vmem:[%s1245_s1] sm:$0xff]  ;;  %v952_v17 = vld [vmem:[#allocation7 + $0x18] sm:$0xff] }
  0x30   :  { %459 = vmatpush.bf16.msra.mxu3 %v823_v16  ;;  %v962_v14 = vld [vmem:[#allocation9 + $0x28] sm:$0xff]  ;;  %v953_v15 = vld [vmem:[#allocation7 + $0x20] sm:$0xff]  ;;  %v951_v19 = vld [vmem:[#allocation7 + $0x10] sm:$0xff] }
  0x31   :  { %v961_v16 = vld [vmem:[#allocation9 + $0x20] sm:$0xff]  ;;  %v959_v20 = vld [vmem:[#allocation9 + $0x10] sm:$0xff]  ;;  %v950_v21 = vld [vmem:[#allocation7 + $0x8] sm:$0xff] }
  0x32   :  { %320 = vmatpush.bf16.msra.mxu1 %v727_v48  ;;  %v783_v48 = vor.u32 %v934_v44, %v782_v43  ;;  %v949_v23 = vld [vmem:[#allocation7] sm:$0xff] }
  0x33   :  { %202 = vmatpush.bf16.msra.mxu0 %v909_v31  ;;  %334 = vmatpush.bf16.msra.mxu2 %v731_v50  ;;  %v798_v31 = vld [vmem:[#allocation6 + $0x20] sm:$0xf]  ;;  %v230_v50 = vperm.slane %v228_v47, 0 }
  0x34   :  { %460 = vmatpush.bf16.msra.mxu3 %v815_v22  ;;  %v958_v22 = vld [vmem:[#allocation9 + $0x8] sm:$0xff]  ;;  %v371_v26 = vld [vmem:[%s1251_s7] sm:$0x3] }
  0x35   :  { %v373_v27 = vperm.slane %v371_v26, 0  ;;  %v374_v29 = vperm.slane %v371_v26, 1 }
  0x36   :  { %203 = vmatmul.bf16.vlgmr.msra.gmra.mxu0 %v908_v32  ;;  %321 = vmatpush.bf16.msra.mxu1 %v719_v54  ;;  %v938_v32 = vld [vmem:[#allocation6 + $0x24] sm:$0xf0]  ;;  %v964_v54 = vld [vmem:[#allocation9 + $0x38] sm:$0xff] }
  0x37   :  { %335 = vmatpush.bf16.msra.mxu2 %v723_v56  ;;  %471 = vmatpush.bf16.msrb.mxu0 %v843_v6  ;;  %v799_v34 = vor.u32 %v938_v32, %v798_v31  ;;  %v955_v56 = vld [vmem:[#allocation7 + $0x30] sm:$0xff]  ;;  %v343_v6 = vld [vmem:[%s1245_s1 + $0x8] sm:$0xff] }
  0x38   :  { %461 = vmatpush.bf16.msra.mxu3 %v807_v28 }
  0x3a   :  { %565 = vmatpush.bf16.msrb.mxu1 %v956_v53 }
  0x3b   :  { %472 = vmatpush.bf16.msrb.mxu0 %v835_v12  ;;  %651 = vmatpush.bf16.msrb.mxu2 %v964_v54 }
  0x3c   :  { %462 = vmatpush.bf16.msra.mxu3 %v799_v34 }
  0x3e   :  { %566 = vmatpush.bf16.msrb.mxu1 %v955_v56 }
  0x3f   :  { %473 = vmatpush.bf16.msrb.mxu0 %v827_v18  ;;  %v960_v18 = vld [vmem:[#allocation9 + $0x18] sm:$0xff] }
  0x40   :  { %463 = vmatpush.bf16.msra.mxu3 %v791_v41 }
  0x42   :  { %567 = vmatpush.bf16.msrb.mxu1 %v954_v13 }
  0x43   :  { %474 = vmatpush.bf16.msrb.mxu0 %v819_v24  ;;  %v957_v24 = vld [vmem:[#allocation9] sm:$0xff] }
  0x44   :  { %464 = vmatpush.bf16.msra.mxu3 %v783_v48  ;;  %v975_v48 = vld [vmem:[%s1253_s9] ss:$0 sm:$0xff] }
  0x46   :  { %568 = vmatpush.bf16.msrb.mxu1 %v953_v15 }
  0x47   :  { %475 = vmatpush.bf16.msrb.mxu0 %v811_v30 }
  0x4a   :  { %569 = vmatpush.bf16.msrb.mxu1 %v952_v17 }
  0x4b   :  { %476 = vmatpush.bf16.msrb.mxu0 %v803_v38 }
  0x4e   :  { %570 = vmatpush.bf16.msrb.mxu1 %v951_v19 }
  0x4f   :  { %477 = vmatpush.bf16.msrb.mxu0 %v795_v42 }
  0x52   :  { %571 = vmatpush.bf16.msrb.mxu1 %v950_v21 }
  0x53   :  { %478 = vmatpush.bf16.msrb.mxu0 %v787_v49 }
  0x56   :  { %572 = vmatpush.bf16.msrb.mxu1 %v949_v23 }
  0xb3   :  { %v204_v57 = vpop.f32.mrf.mxu0 }
  0xb4   :  { %v205_v59 = vadd.f32 %v974_v58, %v204_v57  ;;  %v963_v57 = vld [vmem:[#allocation9 + $0x30] sm:$0xff] }
  0xb5   :  { %652 = vmatpush.bf16.msrb.mxu2 %v963_v57 }
  0xb6   :  { %v209_v62 = vmax.f32 %v205_v59, 0.0 }
  0xb9   :  { %653 = vmatpush.bf16.msrb.mxu2 %v962_v14 }
  0xbb   :  { %v206_v60 = vpop.f32.mrf.mxu0 }
  0xbc   :  { %v207_v61 = vadd.f32 %v974_v58, %v206_v60 }
  0xbd   :  { %654 = vmatpush.bf16.msrb.mxu2 %v961_v16 }
  0xbe   :  { %v210_v63 = vmax.f32 %v207_v61, 0.0 }
  0xc0   :  { %v211_v0 = vpack.c.bf16 %v210_v63, %v209_v62 }
  0xc1   :  { %655 = vmatpush.bf16.msrb.mxu2 %v960_v18 }
  0xc2   :  { %322 = vmatmul.bf16.vlgmr.msra.gmra.mxu1 %v211_v0  ;;  %336 = vmatmul.bf16.vlgmr.msra.gmra.mxu2 %v211_v0 }
  0xc5   :  { %656 = vmatpush.bf16.msrb.mxu2 %v959_v20 }
  0xc9   :  { %657 = vmatpush.bf16.msrb.mxu2 %v958_v22 }
  0xcd   :  { %658 = vmatpush.bf16.msrb.mxu2 %v957_v24 }
 0x13f   :  { %v323_v51 = vpop.f32.mrf.mxu1 }
 0x140   :  { %v324_v52 = vadd.f32 %v323_v51, %v230_v50  ;;  %v976_v51 = vld [vmem:[%s1255_s11] ss:$0 sm:$0xff] }
 0x142   :  { %669 = vst [vmem:[%s1256_s12 + $0x10] sm:$0xff] %v324_v52 }
 0x145   :  { %v337_v58 = vpop.f32.mrf.mxu2 }
 0x146   :  { %v338_v59 = vadd.f32 %v337_v58, %v231_v55 }
 0x147   :  { %v325_v60 = vpop.f32.mrf.mxu1 }
 0x148   :  { %v344_v61 = vmul.f32 0.5, %v338_v59  ;;  %671 = vst [vmem:[%s1256_s12 + $0x18] sm:$0xff] %v338_v59  ;;  %v326_v62 = vadd.f32 %v325_v60, %v230_v50 }
 0x14a   :  { %670 = vst [vmem:[%s1256_s12 + $0x30] sm:$0xff] %v326_v62  ;;  %v346_v63 = vmul.f32 1.442695, %v344_v61 }
 0x14c   :  { %977 = vpow2.f32 %v346_v63 }
 0x14d   :  { %v339_v0 = vpop.f32.mrf.mxu2 }
 0x14e   :  { %v340_v1 = vadd.f32 %v339_v0, %v231_v55 }
 0x150   :  { %v345_v2 = vmul.f32 0.5, %v340_v1  ;;  %672 = vst [vmem:[%s1256_s12 + $0x38] sm:$0xff] %v340_v1 }
 0x152   :  { %v348_v3 = vmul.f32 1.442695, %v345_v2  ;;  %v978_v4 = vpop.eup %977 }
 0x153   :  { %v350_v7 = vmul.f32 %v978_v4, %v342_v5 }
 0x154   :  { %979 = vpow2.f32 %v348_v3 }
 0x155   :  { %v352_v10 = vadd.f32 %v350_v7, %v324_v52 }
 0x15a   :  { %v980_v8 = vpop.eup %979 }
 0x15b   :  { %v351_v9 = vmul.f32 %v980_v8, %v343_v6 }
 0x15d   :  { %v353_v11 = vadd.f32 %v351_v9, %v326_v62 }
 0x15f   :  { %v354_v12 = vpack.c.bf16 %v353_v11, %v352_v10 }
 0x161   :  { %465 = vmatmul.bf16.vlgmr.msra.gmra.mxu3 %v354_v12  ;;  %479 = vmatmul.bf16.vlgmr.msrb.gmra.mxu0 %v354_v12 }
 0x1de   :  { %v480_v25 = vpop.f32.mrf.mxu0 }
 0x1df   :  { %v481_v32 = vadd.f32 %v480_v25, %v374_v29 }
 0x1e1   :  { %v486_v36 = vmax.f32 %v481_v32, 0.0 }
 0x1e4   :  { %v466_v28 = vpop.f32.mrf.mxu3 }
 0x1e5   :  { %v467_v30 = vadd.f32 %v466_v28, %v373_v27 }
 0x1e6   :  { %v482_v31 = vpop.f32.mrf.mxu0 }
 0x1e7   :  { %v485_v33 = vmax.f32 %v467_v30, 0.0  ;;  %v483_v34 = vadd.f32 %v482_v31, %v374_v29 }
 0x1e9   :  { %v489_v38 = vpack.c.bf16 %v486_v36, %v485_v33  ;;  %v488_v39 = vmax.f32 %v483_v34, 0.0 }
 0x1eb   :  { %v513_v42 = vunpack.c.l.b16 %v489_v38  ;;  %v599_v43 = vunpack.c.h.b16 %v489_v38 }
 0x1ec   :  { %v468_v35 = vpop.f32.mrf.mxu3 }
 0x1ed   :  { %v469_v37 = vadd.f32 %v468_v35, %v373_v27 }
 0x1ef   :  { %v487_v40 = vmax.f32 %v469_v37, 0.0 }
 0x1f1   :  { %v490_v41 = vpack.c.bf16 %v488_v39, %v487_v40 }
 0x1f3   :  { %v514_v44 = vunpack.c.l.b16 %v490_v41  ;;  %v600_v45 = vunpack.c.h.b16 %v490_v41 }
 0x1f5   :  { %v515_v46 = vpack.c.b16 %v514_v44, %v513_v42  ;;  %v601_v47 = vpack.c.b16 %v600_v45, %v599_v43 }
 0x1f7   :  { %573 = vmatmul.bf16.vlgmr.msrb.gmra.mxu1 %v515_v46  ;;  %659 = vmatmul.bf16.vlgmr.msrb.gmra.mxu2 %v601_v47 }
 0x274   :  { %v574_v49 = vpop.f32.mrf.mxu1 }
 0x275   :  { %v575_v50 = vadd.f32 %v975_v48, %v574_v49 }
 0x277   :  { %665 = vst [vmem:[%s1256_s12] sm:$0xff] %v575_v50 }
 0x27a   :  { %v660_v52 = vpop.f32.mrf.mxu2 }
 0x27b   :  { %v661_v53 = vadd.f32 %v976_v51, %v660_v52 }
 0x27c   :  { %v576_v54 = vpop.f32.mrf.mxu1 }
 0x27d   :  { %667 = vst [vmem:[%s1256_s12 + $0x8] sm:$0xff] %v661_v53  ;;  %v577_v55 = vadd.f32 %v975_v48, %v576_v54 }
 0x27f   :  { %666 = vst [vmem:[%s1256_s12 + $0x20] sm:$0xff] %v577_v55 }
 0x282   :  { %v662_v56 = vpop.f32.mrf.mxu2 }
 0x283   :  { %v663_v57 = vadd.f32 %v976_v51, %v662_v56 }
 0x285   :  { %668 = vst [vmem:[%s1256_s12 + $0x28] sm:$0xff] %v663_v57 }
 0x286   :  { %677 = vsyncpa [#allocation3], 1 }
 0x287   :  { %678 = vsyncpa [#allocation5], 1 }
 0x288   :  { %679 = vsyncpa [#allocation8], 1 }

</bundles_post_ra>
